<compile_context>
chip_gen: v5e
topology: v5e:2x2
jax: 0.10.0
libtpu: 0.0.40
codegen_flags: <defaults>
</compile_context>

<pallas_src>
import jax
import jax.numpy as jnp
from jax import lax
from jax.experimental import pallas as pl
from jax.experimental.pallas import tpu as pltpu


_VMEM = pl.BlockSpec(memory_space=pltpu.MemorySpace.VMEM)


def _round_up(n, m):
    return -(-n // m) * m


# ----------------------------------------------------------------------------
# Wrapper-side parameter packing (done once, outside the kernel)
# ----------------------------------------------------------------------------
def _build_stack(layer_params, hs):
    """Pack one L-layer LSTM stack into wavefront-fused, gate-major matrices.

    Column layout of width W = 4*L*hs is gate-major: gate k (i,f,g,o) occupies
    columns [k*L*hs, (k+1)*L*hs), layer-major inside.  Hidden/cell state is
    layer-major of width L*hs, so `hcat @ rhs` yields every layer's gate
    pre-activations in one matmul.
    """
    L = len(layer_params)
    in0 = layer_params[0][0].shape[1]
    W = 4 * L * hs
    LH = L * hs

    wih0 = jnp.zeros((in0, W), jnp.float32)     # layer-0 input proj (scattered cols)
    b0 = jnp.zeros((1, W), jnp.float32)         # layer-0 bias (folded into xw)
    rhs = jnp.zeros((LH, W), jnp.float32)       # block recurrent+input matrix
    brest = jnp.zeros((1, W), jnp.float32)      # biases of layers >= 1

    for l, (w_ih, w_hh, b_ih, b_hh) in enumerate(layer_params):
        w_ih = jnp.asarray(w_ih, jnp.float32)
        w_hh = jnp.asarray(w_hh, jnp.float32)
        b = jnp.asarray(b_ih + b_hh, jnp.float32)
        for k in range(4):                       # PyTorch gate order: i, f, g, o
            c0 = k * LH + l * hs
            g_ih = w_ih[k * hs:(k + 1) * hs, :]
            g_hh = w_hh[k * hs:(k + 1) * hs, :]
            g_b = b[k * hs:(k + 1) * hs]
            rhs = rhs.at[l * hs:(l + 1) * hs, c0:c0 + hs].set(g_hh.T)
            if l == 0:
                wih0 = wih0.at[:, c0:c0 + hs].set(g_ih.T)
                b0 = b0.at[0, c0:c0 + hs].set(g_b)
            else:
                rhs = rhs.at[(l - 1) * hs:l * hs, c0:c0 + hs].set(g_ih.T)
                brest = brest.at[0, c0:c0 + hs].set(g_b)

    # scale vector: 0.5 on sigmoid gates (i,f,o), 1.0 on tanh gate (g);
    # gates = tanh(z*s)*s + (1-s)  ==  sigmoid / tanh per lane.
    s = jnp.concatenate([jnp.full((1, LH), v, jnp.float32)
                         for v in (0.5, 0.5, 1.0, 0.5)], axis=1)
    return wih0, b0, rhs, brest, s


def _pack_chunks(chunks, lanes):
    """Stack 2-D chunks (row-padded to x8, lane-padded to `lanes`) into one buffer."""
    layout, parts, r = {}, [], 0
    for name, a in chunks:
        a = jnp.asarray(a, jnp.float32)
        nr, nc = a.shape
        a = jnp.pad(a, ((0, _round_up(nr, 8) - nr), (0, lanes - nc)))
        layout[name] = (r, nr, nc)
        parts.append(a)
        r += a.shape[0]
    return jnp.concatenate(parts, axis=0), layout


# ----------------------------------------------------------------------------
# Fused Pallas kernel
# ----------------------------------------------------------------------------
def _make_kernel(layout, *, S, B, BP, D, H, L, out_lanes):
    WE = 4 * L * H          # encoder packed gate width
    WD = 4 * L * D          # decoder packed gate width
    T = S * B               # decoder chain length (PyTorch repeat semantics)

    def rd(ref, name):
        r0, nr, nc = layout[name]
        return ref[r0:r0 + nr, 0:nc]

    def rd_row(ref, name, row, nc):
        r0, _, _ = layout[name]
        return ref[r0 + row:r0 + row + 1, 0:nc]

    def kernel(w_ref, out_ref):
        # -------- wavefront-fused LSTM stack (all L layers at once) --------
        def run_stack(xw_step, steps, rows, hs, rhs, b_rest, s_vec, collect):
            LH = L * hs
            W = 4 * LH
            # hoist constant broadcasts out of the unrolled loop
            b_rest_f = jnp.broadcast_to(b_rest, (rows, W))
            s_f = jnp.broadcast_to(s_vec, (rows, W))
            post_f = 1.0 - s_f
            hcat = jnp.zeros((rows, LH), jnp.float32)
            ccat = jnp.zeros((rows, LH), jnp.float32)
            outs = []
            for w in range(steps + L - 1):            # fully unrolled wavefront
                if w == 0:
                    z = b_rest_f                      # hcat == 0: skip the matmul
                else:
                    z = jnp.dot(hcat, rhs,
                                preferred_element_type=jnp.float32) + b_rest_f
                if w < steps:                         # layer-0 hoisted input proj
                    z = z + xw_step(w)
                # one wide tanh = i/f/o sigmoids + g tanh for every layer
                g_all = jnp.tanh(z * s_f) * s_f + post_f
                i_g = g_all[:, 0 * LH:1 * LH]
                f_g = g_all[:, 1 * LH:2 * LH]
                g_g = g_all[:, 2 * LH:3 * LH]
                o_g = g_all[:, 3 * LH:4 * LH]
                ccat_n = f_g * ccat + i_g * g_g
                hcat_n = o_g * jnp.tanh(ccat_n)       # one tanh for all layers
                if w < L - 1:                         # keep not-yet-started layers 0
                    lane = lax.broadcasted_iota(jnp.int32, (1, LH), 1)
                    m = (lane < (w + 1) * hs).astype(jnp.float32)
                    ccat_n = ccat_n * m
                    hcat_n = hcat_n * m
                ccat, hcat = ccat_n, hcat_n
                if collect and w >= L - 1:            # top layer's step (w - L + 1)
                    outs.append(hcat[:, (L - 1) * hs:L * hs])
            return hcat, outs

        # ------------------------------ encoder ------------------------------
        x_pad = rd(w_ref, "x")                                    # (S*BP, D)
        wih_e0 = rd(w_ref, "wih_e0")                              # (D, WE)
        b_e0 = rd_row(w_ref, "misc", 0, WE)
        xw_e = jnp.dot(x_pad, wih_e0,
                       preferred_element_type=jnp.float32) + b_e0  # (S*BP, WE)
        hcat_e, _ = run_stack(lambda w: xw_e[w * BP:(w + 1) * BP, :],
                              S, BP, H,
                              rd(w_ref, "rhs_enc"),
                              rd_row(w_ref, "misc", 1, WE),
                              rd_row(w_ref, "misc", 2, WE),
                              collect=False)
        hlast = hcat_e[:, (L - 1) * H:L * H]                      # (BP, H)

        # ------------------------------ decoder ------------------------------
        # PyTorch: hn[-1].unsqueeze(0).repeat(1, S, 1) -> batch-1 LSTM over
        # T = B*S chained steps, input at step t being hlast[t % B].
        wih_d0 = rd(w_ref, "wih_d0")                              # (H, WD)
        b_d0 = rd_row(w_ref, "misc", 3, WD)
        base = jnp.dot(hlast, wih_d0,
                       preferred_element_type=jnp.float32) + b_d0  # (BP, WD)
        base_rows = [base[b:b + 1, :] for b in range(B)]          # B extracts, hoisted
        _, outs = run_stack(lambda w: base_rows[w % B],
                            T, 1, D,
                            rd(w_ref, "rhs_dec"),
                            rd_row(w_ref, "misc", 4, WD),
                            rd_row(w_ref, "misc", 5, WD),
                            collect=True)
        decoded = jnp.concatenate(outs, axis=0)                   # (T, D)

        # ---------------- final linear, lane-dense output store --------------
        wlin = rd(w_ref, "wlin")                                  # (D, out_lanes)
        b_lin = rd_row(w_ref, "misc", 6, out_lanes)
        out_ref[...] = (jnp.dot(decoded, wlin,
                                preferred_element_type=jnp.float32) + b_lin)

    return kernel


# ----------------------------------------------------------------------------
# Wrapper
# ----------------------------------------------------------------------------
def autoencoder_forward_pallas(x, params):
    """x: (B, S, D) batch-first, like the PyTorch module."""
    B, S, D = x.shape
    H = params["encoder"][0][1].shape[1]          # w_hh: (4H, H)
    L = len(params["encoder"])
    BP = _round_up(B, 8)                          # sublane-aligned batch rows
    T = S * B
    WE, WD = 4 * L * H, 4 * L * D
    out_lanes = _round_up(D, 128)
    lanes = max(WE, WD, out_lanes, 128)

    # time-major input, batch padded to BP rows: row t*BP + b = x[b, t]
    x_pad = (jnp.zeros((S, BP, D), jnp.float32)
             .at[:, :B, :].set(jnp.transpose(x, (1, 0, 2)).astype(jnp.float32))
             .reshape(S * BP, D))

    wih_e0, b_e0, rhs_e, br_e, s_e = _build_stack(params["encoder"], H)
    wih_d0, b_d0, rhs_d, br_d, s_d = _build_stack(params["decoder"], D)

    wlin = (jnp.zeros((D, out_lanes), jnp.float32)
            .at[:, :D].set(jnp.transpose(params["linear_w"]).astype(jnp.float32)))
    misc = jnp.zeros((8, lanes), jnp.float32)
    misc = misc.at[0, :WE].set(b_e0[0]).at[1, :WE].set(br_e[0]).at[2, :WE].set(s_e[0])
    misc = misc.at[3, :WD].set(b_d0[0]).at[4, :WD].set(br_d[0]).at[5, :WD].set(s_d[0])
    misc = misc.at[6, :D].set(params["linear_b"].astype(jnp.float32))

    wbuf, layout = _pack_chunks(
        [("x", x_pad), ("wih_e0", wih_e0), ("rhs_enc", rhs_e),
         ("wih_d0", wih_d0), ("rhs_dec", rhs_d), ("wlin", wlin), ("misc", misc)],
        lanes)

    kernel = _make_kernel(layout, S=S, B=B, BP=BP, D=D, H=H, L=L,
                          out_lanes=out_lanes)
    out = pl.pallas_call(
        kernel,
        out_shape=jax.ShapeDtypeStruct((T, out_lanes), jnp.float32),
        in_specs=[_VMEM],
        out_specs=_VMEM,
    )(wbuf)

    # PyTorch: decoded.view(-1, D) -> linear -> view(B, S, -1)
    return out[:, :D].reshape(B, S, D)


# ----------------------------------------------------------------------------
# Pure-JAX reference (same math, for correctness check)
# ----------------------------------------------------------------------------
def lstm_layer_ref(x_sbd, w_ih, w_hh, b_ih, b_hh):
    S, B, _ = x_sbd.shape
    H = w_hh.shape[1]
    hp = lax.Precision.HIGHEST

    def step(carry, x_t):
        h, c = carry
        z = (jnp.dot(x_t, w_ih.T, precision=hp)
             + jnp.dot(h, w_hh.T, precision=hp) + b_ih + b_hh)
        i_g = jax.nn.sigmoid(z[:, :H])
        f_g = jax.nn.sigmoid(z[:, H:2 * H])
        g_g = jnp.tanh(z[:, 2 * H:3 * H])
        o_g = jax.nn.sigmoid(z[:, 3 * H:])
        c = f_g * c + i_g * g_g
        h = o_g * jnp.tanh(c)
        return (h, c), h

    init = (jnp.zeros((B, H), jnp.float32), jnp.zeros((B, H), jnp.float32))
    (h, _), hseq = lax.scan(step, init, x_sbd)
    return hseq, h


def autoencoder_forward_ref(x, params):
    B, S, D = x.shape
    seq = jnp.transpose(x, (1, 0, 2))                 # (S, B, D) time-major
    hlast = None
    for lp in params["encoder"]:
        seq, hlast = lstm_layer_ref(seq, *lp)
    dec_in = jnp.tile(hlast, (S, 1))[:, None, :]      # (B*S, 1, H) time-major
    seq = dec_in
    for lp in params["decoder"]:
        seq, _ = lstm_layer_ref(seq, *lp)
    decoded = seq.reshape(B * S, D)
    out = (jnp.dot(decoded, params["linear_w"].T, precision=lax.Precision.HIGHEST)
           + params["linear_b"])
    return out.reshape(B, S, D)


# ----------------------------------------------------------------------------
# Deterministic parameter init (shapes follow nn.LSTM / nn.Linear)
# ----------------------------------------------------------------------------
def init_params(key, input_dim, hidden_dim, num_layers):
    def u(k, shape, scale=0.1):
        return jax.random.uniform(k, shape, jnp.float32, -scale, scale)

    params = {"encoder": [], "decoder": []}
    for l in range(num_layers):                       # LSTM(input_dim -> hidden_dim)
        din = input_dim if l == 0 else hidden_dim
        key, k1, k2, k3, k4 = jax.random.split(key, 5)
        params["encoder"].append((u(k1, (4 * hidden_dim, din)),
                                  u(k2, (4 * hidden_dim, hidden_dim)),
                                  u(k3, (4 * hidden_dim,)),
                                  u(k4, (4 * hidden_dim,))))
    for l in range(num_layers):                       # LSTM(hidden_dim -> input_dim)
        din = hidden_dim if l == 0 else input_dim
        key, k1, k2, k3, k4 = jax.random.split(key, 5)
        params["decoder"].append((u(k1, (4 * input_dim, din)),
                                  u(k2, (4 * input_dim, input_dim)),
                                  u(k3, (4 * input_dim,)),
                                  u(k4, (4 * input_dim,))))
    key, k1, k2 = jax.random.split(key, 3)
    params["linear_w"] = u(k1, (input_dim, input_dim))
    params["linear_b"] = u(k2, (input_dim,))
    return params


# ----------------------------------------------------------------------------
if __name__ == "__main__":
    batch, seq_len, input_dim, hidden_dim, num_layers = 2, 8, 16, 32, 2

    root = jax.random.PRNGKey(0)
    k_x, k_p = jax.random.split(root)
    x = jax.random.normal(k_x, (batch, seq_len, input_dim), jnp.float32)
    params = init_params(k_p, input_dim, hidden_dim, num_layers)

    out = autoencoder_forward_pallas(x, params)
    out = jax.block_until_ready(out)

    ref = autoencoder_forward_ref(x, params)
    ref = jax.block_until_ready(ref)

    assert out.shape == (batch, seq_len, input_dim)
    assert jnp.allclose(out, ref, atol=2e-4, rtol=2e-4), "Pallas/ref mismatch"

    print("KERNEL_OK")
</pallas_src>

<mosaic_0001>
module attributes {stable_mosaic.version = 11 : i64} {
  func.func @kernel(%arg0: memref<232x256xf32, #tpu.memory_space<vmem>>, %arg1: memref<16x128xf32, #tpu.memory_space<vmem>>) attributes {dimension_semantics = [], scalar_prefetch = 0 : i64, scratch_operands = 0 : i64, tpu.core_type = #tpu.core_type<tc>} {
    %c0 = arith.constant 0 : index
    %c0_0 = arith.constant 0 : index
    %0 = vector.load %arg0[%c0, %c0_0] : memref<232x256xf32, #tpu.memory_space<vmem>>, vector<64x16xf32>
    %c64 = arith.constant 64 : index
    %c0_1 = arith.constant 0 : index
    %1 = vector.load %arg0[%c64, %c0_1] : memref<232x256xf32, #tpu.memory_space<vmem>>, vector<16x256xf32>
    %c224 = arith.constant 224 : index
    %c0_2 = arith.constant 0 : index
    %2 = vector.load %arg0[%c224, %c0_2] : memref<232x256xf32, #tpu.memory_space<vmem>>, vector<1x256xf32>
    %cst = arith.constant dense<0.000000e+00> : vector<64x256xf32>
    %3 = tpu.matmul %0, %1, %cst {dimension_numbers = #tpu.dot_dimension_numbers<[1], [0], [0], [1], [0, 0, 1, 1], [], []>} : vector<64x16xf32>, vector<16x256xf32>, vector<64x256xf32> -> vector<64x256xf32>
    %4 = vector.broadcast %2 : vector<1x256xf32> to vector<64x256xf32>
    %5 = arith.addf %3, %4 : vector<64x256xf32>
    %c80 = arith.constant 80 : index
    %c0_3 = arith.constant 0 : index
    %6 = vector.load %arg0[%c80, %c0_3] : memref<232x256xf32, #tpu.memory_space<vmem>>, vector<64x256xf32>
    %c225 = arith.constant 225 : index
    %c0_4 = arith.constant 0 : index
    %7 = vector.load %arg0[%c225, %c0_4] : memref<232x256xf32, #tpu.memory_space<vmem>>, vector<1x256xf32>
    %c226 = arith.constant 226 : index
    %c0_5 = arith.constant 0 : index
    %8 = vector.load %arg0[%c226, %c0_5] : memref<232x256xf32, #tpu.memory_space<vmem>>, vector<1x256xf32>
    %9 = vector.shape_cast %7 : vector<1x256xf32> to vector<1x256xf32>
    %10 = vector.broadcast %9 : vector<1x256xf32> to vector<8x256xf32>
    %11 = vector.shape_cast %8 : vector<1x256xf32> to vector<1x256xf32>
    %12 = vector.broadcast %11 : vector<1x256xf32> to vector<8x256xf32>
    %cst_6 = arith.constant 1.000000e+00 : f32
    %13 = vector.broadcast %cst_6 : f32 to vector<8x256xf32>
    %14 = arith.subf %13, %12 : vector<8x256xf32>
    %cst_7 = arith.constant 0.000000e+00 : f32
    %15 = vector.broadcast %cst_7 : f32 to vector<8x64xf32>
    %16 = vector.extract_strided_slice %5 {offsets = [0, 0], sizes = [8, 256], strides = [1, 1]} : vector<64x256xf32> to vector<8x256xf32>
    %17 = arith.addf %10, %16 : vector<8x256xf32>
    %18 = arith.mulf %17, %12 : vector<8x256xf32>
    %19 = math.tanh %18 : vector<8x256xf32>
    %20 = arith.mulf %19, %12 : vector<8x256xf32>
    %21 = arith.addf %20, %14 : vector<8x256xf32>
    %22 = vector.extract_strided_slice %21 {offsets = [0, 0], sizes = [8, 64], strides = [1, 1]} : vector<8x256xf32> to vector<8x64xf32>
    %23 = vector.extract_strided_slice %21 {offsets = [0, 64], sizes = [8, 64], strides = [1, 1]} : vector<8x256xf32> to vector<8x64xf32>
    %24 = vector.extract_strided_slice %21 {offsets = [0, 128], sizes = [8, 64], strides = [1, 1]} : vector<8x256xf32> to vector<8x64xf32>
    %25 = vector.extract_strided_slice %21 {offsets = [0, 192], sizes = [8, 64], strides = [1, 1]} : vector<8x256xf32> to vector<8x64xf32>
    %26 = arith.mulf %23, %15 : vector<8x64xf32>
    %27 = arith.mulf %22, %24 : vector<8x64xf32>
    %28 = arith.addf %26, %27 : vector<8x64xf32>
    %29 = math.tanh %28 : vector<8x64xf32>
    %30 = arith.mulf %25, %29 : vector<8x64xf32>
    %31 = tpu.iota {dimensions = array<i32: 1>} : vector<1x64xi32>
    %c32_i32 = arith.constant 32 : i32
    %32 = vector.broadcast %c32_i32 : i32 to vector<1x64xi32>
    %33 = arith.cmpi slt, %31, %32 : vector<1x64xi32>
    %34 = arith.extui %33 : vector<1x64xi1> to vector<1x64xi32>
    %35 = arith.sitofp %34 : vector<1x64xi32> to vector<1x64xf32>
    %36 = vector.broadcast %35 : vector<1x64xf32> to vector<8x64xf32>
    %37 = arith.mulf %28, %36 : vector<8x64xf32>
    %38 = vector.broadcast %35 : vector<1x64xf32> to vector<8x64xf32>
    %39 = arith.mulf %30, %38 : vector<8x64xf32>
    %cst_8 = arith.constant dense<0.000000e+00> : vector<8x256xf32>
    %40 = tpu.matmul %39, %6, %cst_8 {dimension_numbers = #tpu.dot_dimension_numbers<[1], [0], [0], [1], [0, 0, 1, 1], [], []>} : vector<8x64xf32>, vector<64x256xf32>, vector<8x256xf32> -> vector<8x256xf32>
    %41 = arith.addf %40, %10 : vector<8x256xf32>
    %42 = vector.extract_strided_slice %5 {offsets = [8, 0], sizes = [8, 256], strides = [1, 1]} : vector<64x256xf32> to vector<8x256xf32>
    %43 = arith.addf %41, %42 : vector<8x256xf32>
    %44 = arith.mulf %43, %12 : vector<8x256xf32>
    %45 = math.tanh %44 : vector<8x256xf32>
    %46 = arith.mulf %45, %12 : vector<8x256xf32>
    %47 = arith.addf %46, %14 : vector<8x256xf32>
    %48 = vector.extract_strided_slice %47 {offsets = [0, 0], sizes = [8, 64], strides = [1, 1]} : vector<8x256xf32> to vector<8x64xf32>
    %49 = vector.extract_strided_slice %47 {offsets = [0, 64], sizes = [8, 64], strides = [1, 1]} : vector<8x256xf32> to vector<8x64xf32>
    %50 = vector.extract_strided_slice %47 {offsets = [0, 128], sizes = [8, 64], strides = [1, 1]} : vector<8x256xf32> to vector<8x64xf32>
    %51 = vector.extract_strided_slice %47 {offsets = [0, 192], sizes = [8, 64], strides = [1, 1]} : vector<8x256xf32> to vector<8x64xf32>
    %52 = arith.mulf %49, %37 : vector<8x64xf32>
    %53 = arith.mulf %48, %50 : vector<8x64xf32>
    %54 = arith.addf %52, %53 : vector<8x64xf32>
    %55 = math.tanh %54 : vector<8x64xf32>
    %56 = arith.mulf %51, %55 : vector<8x64xf32>
    %cst_9 = arith.constant dense<0.000000e+00> : vector<8x256xf32>
    %57 = tpu.matmul %56, %6, %cst_9 {dimension_numbers = #tpu.dot_dimension_numbers<[1], [0], [0], [1], [0, 0, 1, 1], [], []>} : vector<8x64xf32>, vector<64x256xf32>, vector<8x256xf32> -> vector<8x256xf32>
    %58 = arith.addf %57, %10 : vector<8x256xf32>
    %59 = vector.extract_strided_slice %5 {offsets = [16, 0], sizes = [8, 256], strides = [1, 1]} : vector<64x256xf32> to vector<8x256xf32>
    %60 = arith.addf %58, %59 : vector<8x256xf32>
    %61 = arith.mulf %60, %12 : vector<8x256xf32>
    %62 = math.tanh %61 : vector<8x256xf32>
    %63 = arith.mulf %62, %12 : vector<8x256xf32>
    %64 = arith.addf %63, %14 : vector<8x256xf32>
    %65 = vector.extract_strided_slice %64 {offsets = [0, 0], sizes = [8, 64], strides = [1, 1]} : vector<8x256xf32> to vector<8x64xf32>
    %66 = vector.extract_strided_slice %64 {offsets = [0, 64], sizes = [8, 64], strides = [1, 1]} : vector<8x256xf32> to vector<8x64xf32>
    %67 = vector.extract_strided_slice %64 {offsets = [0, 128], sizes = [8, 64], strides = [1, 1]} : vector<8x256xf32> to vector<8x64xf32>
    %68 = vector.extract_strided_slice %64 {offsets = [0, 192], sizes = [8, 64], strides = [1, 1]} : vector<8x256xf32> to vector<8x64xf32>
    %69 = arith.mulf %66, %54 : vector<8x64xf32>
    %70 = arith.mulf %65, %67 : vector<8x64xf32>
    %71 = arith.addf %69, %70 : vector<8x64xf32>
    %72 = math.tanh %71 : vector<8x64xf32>
    %73 = arith.mulf %68, %72 : vector<8x64xf32>
    %cst_10 = arith.constant dense<0.000000e+00> : vector<8x256xf32>
    %74 = tpu.matmul %73, %6, %cst_10 {dimension_numbers = #tpu.dot_dimension_numbers<[1], [0], [0], [1], [0, 0, 1, 1], [], []>} : vector<8x64xf32>, vector<64x256xf32>, vector<8x256xf32> -> vector<8x256xf32>
    %75 = arith.addf %74, %10 : vector<8x256xf32>
    %76 = vector.extract_strided_slice %5 {offsets = [24, 0], sizes = [8, 256], strides = [1, 1]} : vector<64x256xf32> to vector<8x256xf32>
    %77 = arith.addf %75, %76 : vector<8x256xf32>
    %78 = arith.mulf %77, %12 : vector<8x256xf32>
    %79 = math.tanh %78 : vector<8x256xf32>
    %80 = arith.mulf %79, %12 : vector<8x256xf32>
    %81 = arith.addf %80, %14 : vector<8x256xf32>
    %82 = vector.extract_strided_slice %81 {offsets = [0, 0], sizes = [8, 64], strides = [1, 1]} : vector<8x256xf32> to vector<8x64xf32>
    %83 = vector.extract_strided_slice %81 {offsets = [0, 64], sizes = [8, 64], strides = [1, 1]} : vector<8x256xf32> to vector<8x64xf32>
    %84 = vector.extract_strided_slice %81 {offsets = [0, 128], sizes = [8, 64], strides = [1, 1]} : vector<8x256xf32> to vector<8x64xf32>
    %85 = vector.extract_strided_slice %81 {offsets = [0, 192], sizes = [8, 64], strides = [1, 1]} : vector<8x256xf32> to vector<8x64xf32>
    %86 = arith.mulf %83, %71 : vector<8x64xf32>
    %87 = arith.mulf %82, %84 : vector<8x64xf32>
    %88 = arith.addf %86, %87 : vector<8x64xf32>
    %89 = math.tanh %88 : vector<8x64xf32>
    %90 = arith.mulf %85, %89 : vector<8x64xf32>
    %cst_11 = arith.constant dense<0.000000e+00> : vector<8x256xf32>
    %91 = tpu.matmul %90, %6, %cst_11 {dimension_numbers = #tpu.dot_dimension_numbers<[1], [0], [0], [1], [0, 0, 1, 1], [], []>} : vector<8x64xf32>, vector<64x256xf32>, vector<8x256xf32> -> vector<8x256xf32>
    %92 = arith.addf %91, %10 : vector<8x256xf32>
    %93 = vector.extract_strided_slice %5 {offsets = [32, 0], sizes = [8, 256], strides = [1, 1]} : vector<64x256xf32> to vector<8x256xf32>
    %94 = arith.addf %92, %93 : vector<8x256xf32>
    %95 = arith.mulf %94, %12 : vector<8x256xf32>
    %96 = math.tanh %95 : vector<8x256xf32>
    %97 = arith.mulf %96, %12 : vector<8x256xf32>
    %98 = arith.addf %97, %14 : vector<8x256xf32>
    %99 = vector.extract_strided_slice %98 {offsets = [0, 0], sizes = [8, 64], strides = [1, 1]} : vector<8x256xf32> to vector<8x64xf32>
    %100 = vector.extract_strided_slice %98 {offsets = [0, 64], sizes = [8, 64], strides = [1, 1]} : vector<8x256xf32> to vector<8x64xf32>
    %101 = vector.extract_strided_slice %98 {offsets = [0, 128], sizes = [8, 64], strides = [1, 1]} : vector<8x256xf32> to vector<8x64xf32>
    %102 = vector.extract_strided_slice %98 {offsets = [0, 192], sizes = [8, 64], strides = [1, 1]} : vector<8x256xf32> to vector<8x64xf32>
    %103 = arith.mulf %100, %88 : vector<8x64xf32>
    %104 = arith.mulf %99, %101 : vector<8x64xf32>
    %105 = arith.addf %103, %104 : vector<8x64xf32>
    %106 = math.tanh %105 : vector<8x64xf32>
    %107 = arith.mulf %102, %106 : vector<8x64xf32>
    %cst_12 = arith.constant dense<0.000000e+00> : vector<8x256xf32>
    %108 = tpu.matmul %107, %6, %cst_12 {dimension_numbers = #tpu.dot_dimension_numbers<[1], [0], [0], [1], [0, 0, 1, 1], [], []>} : vector<8x64xf32>, vector<64x256xf32>, vector<8x256xf32> -> vector<8x256xf32>
    %109 = arith.addf %108, %10 : vector<8x256xf32>
    %110 = vector.extract_strided_slice %5 {offsets = [40, 0], sizes = [8, 256], strides = [1, 1]} : vector<64x256xf32> to vector<8x256xf32>
    %111 = arith.addf %109, %110 : vector<8x256xf32>
    %112 = arith.mulf %111, %12 : vector<8x256xf32>
    %113 = math.tanh %112 : vector<8x256xf32>
    %114 = arith.mulf %113, %12 : vector<8x256xf32>
    %115 = arith.addf %114, %14 : vector<8x256xf32>
    %116 = vector.extract_strided_slice %115 {offsets = [0, 0], sizes = [8, 64], strides = [1, 1]} : vector<8x256xf32> to vector<8x64xf32>
    %117 = vector.extract_strided_slice %115 {offsets = [0, 64], sizes = [8, 64], strides = [1, 1]} : vector<8x256xf32> to vector<8x64xf32>
    %118 = vector.extract_strided_slice %115 {offsets = [0, 128], sizes = [8, 64], strides = [1, 1]} : vector<8x256xf32> to vector<8x64xf32>
    %119 = vector.extract_strided_slice %115 {offsets = [0, 192], sizes = [8, 64], strides = [1, 1]} : vector<8x256xf32> to vector<8x64xf32>
    %120 = arith.mulf %117, %105 : vector<8x64xf32>
    %121 = arith.mulf %116, %118 : vector<8x64xf32>
    %122 = arith.addf %120, %121 : vector<8x64xf32>
    %123 = math.tanh %122 : vector<8x64xf32>
    %124 = arith.mulf %119, %123 : vector<8x64xf32>
    %cst_13 = arith.constant dense<0.000000e+00> : vector<8x256xf32>
    %125 = tpu.matmul %124, %6, %cst_13 {dimension_numbers = #tpu.dot_dimension_numbers<[1], [0], [0], [1], [0, 0, 1, 1], [], []>} : vector<8x64xf32>, vector<64x256xf32>, vector<8x256xf32> -> vector<8x256xf32>
    %126 = arith.addf %125, %10 : vector<8x256xf32>
    %127 = vector.extract_strided_slice %5 {offsets = [48, 0], sizes = [8, 256], strides = [1, 1]} : vector<64x256xf32> to vector<8x256xf32>
    %128 = arith.addf %126, %127 : vector<8x256xf32>
    %129 = arith.mulf %128, %12 : vector<8x256xf32>
    %130 = math.tanh %129 : vector<8x256xf32>
    %131 = arith.mulf %130, %12 : vector<8x256xf32>
    %132 = arith.addf %131, %14 : vector<8x256xf32>
    %133 = vector.extract_strided_slice %132 {offsets = [0, 0], sizes = [8, 64], strides = [1, 1]} : vector<8x256xf32> to vector<8x64xf32>
    %134 = vector.extract_strided_slice %132 {offsets = [0, 64], sizes = [8, 64], strides = [1, 1]} : vector<8x256xf32> to vector<8x64xf32>
    %135 = vector.extract_strided_slice %132 {offsets = [0, 128], sizes = [8, 64], strides = [1, 1]} : vector<8x256xf32> to vector<8x64xf32>
    %136 = vector.extract_strided_slice %132 {offsets = [0, 192], sizes = [8, 64], strides = [1, 1]} : vector<8x256xf32> to vector<8x64xf32>
    %137 = arith.mulf %134, %122 : vector<8x64xf32>
    %138 = arith.mulf %133, %135 : vector<8x64xf32>
    %139 = arith.addf %137, %138 : vector<8x64xf32>
    %140 = math.tanh %139 : vector<8x64xf32>
    %141 = arith.mulf %136, %140 : vector<8x64xf32>
    %cst_14 = arith.constant dense<0.000000e+00> : vector<8x256xf32>
    %142 = tpu.matmul %141, %6, %cst_14 {dimension_numbers = #tpu.dot_dimension_numbers<[1], [0], [0], [1], [0, 0, 1, 1], [], []>} : vector<8x64xf32>, vector<64x256xf32>, vector<8x256xf32> -> vector<8x256xf32>
    %143 = arith.addf %142, %10 : vector<8x256xf32>
    %144 = vector.extract_strided_slice %5 {offsets = [56, 0], sizes = [8, 256], strides = [1, 1]} : vector<64x256xf32> to vector<8x256xf32>
    %145 = arith.addf %143, %144 : vector<8x256xf32>
    %146 = arith.mulf %145, %12 : vector<8x256xf32>
    %147 = math.tanh %146 : vector<8x256xf32>
    %148 = arith.mulf %147, %12 : vector<8x256xf32>
    %149 = arith.addf %148, %14 : vector<8x256xf32>
    %150 = vector.extract_strided_slice %149 {offsets = [0, 0], sizes = [8, 64], strides = [1, 1]} : vector<8x256xf32> to vector<8x64xf32>
    %151 = vector.extract_strided_slice %149 {offsets = [0, 64], sizes = [8, 64], strides = [1, 1]} : vector<8x256xf32> to vector<8x64xf32>
    %152 = vector.extract_strided_slice %149 {offsets = [0, 128], sizes = [8, 64], strides = [1, 1]} : vector<8x256xf32> to vector<8x64xf32>
    %153 = vector.extract_strided_slice %149 {offsets = [0, 192], sizes = [8, 64], strides = [1, 1]} : vector<8x256xf32> to vector<8x64xf32>
    %154 = arith.mulf %151, %139 : vector<8x64xf32>
    %155 = arith.mulf %150, %152 : vector<8x64xf32>
    %156 = arith.addf %154, %155 : vector<8x64xf32>
    %157 = math.tanh %156 : vector<8x64xf32>
    %158 = arith.mulf %153, %157 : vector<8x64xf32>
    %cst_15 = arith.constant dense<0.000000e+00> : vector<8x256xf32>
    %159 = tpu.matmul %158, %6, %cst_15 {dimension_numbers = #tpu.dot_dimension_numbers<[1], [0], [0], [1], [0, 0, 1, 1], [], []>} : vector<8x64xf32>, vector<64x256xf32>, vector<8x256xf32> -> vector<8x256xf32>
    %160 = arith.addf %159, %10 : vector<8x256xf32>
    %161 = arith.mulf %160, %12 : vector<8x256xf32>
    %162 = math.tanh %161 : vector<8x256xf32>
    %163 = arith.mulf %162, %12 : vector<8x256xf32>
    %164 = arith.addf %163, %14 : vector<8x256xf32>
    %165 = vector.extract_strided_slice %164 {offsets = [0, 0], sizes = [8, 64], strides = [1, 1]} : vector<8x256xf32> to vector<8x64xf32>
    %166 = vector.extract_strided_slice %164 {offsets = [0, 64], sizes = [8, 64], strides = [1, 1]} : vector<8x256xf32> to vector<8x64xf32>
    %167 = vector.extract_strided_slice %164 {offsets = [0, 128], sizes = [8, 64], strides = [1, 1]} : vector<8x256xf32> to vector<8x64xf32>
    %168 = vector.extract_strided_slice %164 {offsets = [0, 192], sizes = [8, 64], strides = [1, 1]} : vector<8x256xf32> to vector<8x64xf32>
    %169 = arith.mulf %166, %156 : vector<8x64xf32>
    %170 = arith.mulf %165, %167 : vector<8x64xf32>
    %171 = arith.addf %169, %170 : vector<8x64xf32>
    %172 = math.tanh %171 : vector<8x64xf32>
    %173 = arith.mulf %168, %172 : vector<8x64xf32>
    %174 = vector.extract_strided_slice %173 {offsets = [0, 32], sizes = [8, 32], strides = [1, 1]} : vector<8x64xf32> to vector<8x32xf32>
    %c144 = arith.constant 144 : index
    %c0_16 = arith.constant 0 : index
    %175 = vector.load %arg0[%c144, %c0_16] : memref<232x256xf32, #tpu.memory_space<vmem>>, vector<32x128xf32>
    %c227 = arith.constant 227 : index
    %c0_17 = arith.constant 0 : index
    %176 = vector.load %arg0[%c227, %c0_17] : memref<232x256xf32, #tpu.memory_space<vmem>>, vector<1x128xf32>
    %cst_18 = arith.constant dense<0.000000e+00> : vector<8x128xf32>
    %177 = tpu.matmul %174, %175, %cst_18 {dimension_numbers = #tpu.dot_dimension_numbers<[1], [0], [0], [1], [0, 0, 1, 1], [], []>} : vector<8x32xf32>, vector<32x128xf32>, vector<8x128xf32> -> vector<8x128xf32>
    %178 = vector.broadcast %176 : vector<1x128xf32> to vector<8x128xf32>
    %179 = arith.addf %177, %178 : vector<8x128xf32>
    %180 = vector.extract_strided_slice %179 {offsets = [0, 0], sizes = [1, 128], strides = [1, 1]} : vector<8x128xf32> to vector<1x128xf32>
    %181 = vector.extract_strided_slice %179 {offsets = [1, 0], sizes = [1, 128], strides = [1, 1]} : vector<8x128xf32> to vector<1x128xf32>
    %c176 = arith.constant 176 : index
    %c0_19 = arith.constant 0 : index
    %182 = vector.load %arg0[%c176, %c0_19] : memref<232x256xf32, #tpu.memory_space<vmem>>, vector<32x128xf32>
    %c228 = arith.constant 228 : index
    %c0_20 = arith.constant 0 : index
    %183 = vector.load %arg0[%c228, %c0_20] : memref<232x256xf32, #tpu.memory_space<vmem>>, vector<1x128xf32>
    %c229 = arith.constant 229 : index
    %c0_21 = arith.constant 0 : index
    %184 = vector.load %arg0[%c229, %c0_21] : memref<232x256xf32, #tpu.memory_space<vmem>>, vector<1x128xf32>
    %cst_22 = arith.constant 1.000000e+00 : f32
    %185 = vector.broadcast %cst_22 : f32 to vector<1x128xf32>
    %186 = arith.subf %185, %184 : vector<1x128xf32>
    %cst_23 = arith.constant 0.000000e+00 : f32
    %187 = vector.broadcast %cst_23 : f32 to vector<1x32xf32>
    %188 = arith.addf %183, %180 : vector<1x128xf32>
    %189 = arith.mulf %188, %184 : vector<1x128xf32>
    %190 = math.tanh %189 : vector<1x128xf32>
    %191 = arith.mulf %190, %184 : vector<1x128xf32>
    %192 = arith.addf %191, %186 : vector<1x128xf32>
    %193 = vector.extract_strided_slice %192 {offsets = [0, 0], sizes = [1, 32], strides = [1, 1]} : vector<1x128xf32> to vector<1x32xf32>
    %194 = vector.extract_strided_slice %192 {offsets = [0, 32], sizes = [1, 32], strides = [1, 1]} : vector<1x128xf32> to vector<1x32xf32>
    %195 = vector.extract_strided_slice %192 {offsets = [0, 64], sizes = [1, 32], strides = [1, 1]} : vector<1x128xf32> to vector<1x32xf32>
    %196 = vector.extract_strided_slice %192 {offsets = [0, 96], sizes = [1, 32], strides = [1, 1]} : vector<1x128xf32> to vector<1x32xf32>
    %197 = arith.mulf %194, %187 : vector<1x32xf32>
    %198 = arith.mulf %193, %195 : vector<1x32xf32>
    %199 = arith.addf %197, %198 : vector<1x32xf32>
    %200 = math.tanh %199 : vector<1x32xf32>
    %201 = arith.mulf %196, %200 : vector<1x32xf32>
    %202 = tpu.iota {dimensions = array<i32: 1>} : vector<1x32xi32>
    %c16_i32 = arith.constant 16 : i32
    %203 = vector.broadcast %c16_i32 : i32 to vector<1x32xi32>
    %204 = arith.cmpi slt, %202, %203 : vector<1x32xi32>
    %205 = arith.extui %204 : vector<1x32xi1> to vector<1x32xi32>
    %206 = arith.sitofp %205 : vector<1x32xi32> to vector<1x32xf32>
    %207 = arith.mulf %199, %206 : vector<1x32xf32>
    %208 = arith.mulf %201, %206 : vector<1x32xf32>
    %cst_24 = arith.constant dense<0.000000e+00> : vector<1x128xf32>
    %209 = tpu.matmul %208, %182, %cst_24 {dimension_numbers = #tpu.dot_dimension_numbers<[1], [0], [0], [1], [0, 0, 1, 1], [], []>} : vector<1x32xf32>, vector<32x128xf32>, vector<1x128xf32> -> vector<1x128xf32>
    %210 = arith.addf %209, %183 : vector<1x128xf32>
    %211 = arith.addf %210, %181 : vector<1x128xf32>
    %212 = arith.mulf %211, %184 : vector<1x128xf32>
    %213 = math.tanh %212 : vector<1x128xf32>
    %214 = arith.mulf %213, %184 : vector<1x128xf32>
    %215 = arith.addf %214, %186 : vector<1x128xf32>
    %216 = vector.extract_strided_slice %215 {offsets = [0, 0], sizes = [1, 32], strides = [1, 1]} : vector<1x128xf32> to vector<1x32xf32>
    %217 = vector.extract_strided_slice %215 {offsets = [0, 32], sizes = [1, 32], strides = [1, 1]} : vector<1x128xf32> to vector<1x32xf32>
    %218 = vector.extract_strided_slice %215 {offsets = [0, 64], sizes = [1, 32], strides = [1, 1]} : vector<1x128xf32> to vector<1x32xf32>
    %219 = vector.extract_strided_slice %215 {offsets = [0, 96], sizes = [1, 32], strides = [1, 1]} : vector<1x128xf32> to vector<1x32xf32>
    %220 = arith.mulf %217, %207 : vector<1x32xf32>
    %221 = arith.mulf %216, %218 : vector<1x32xf32>
    %222 = arith.addf %220, %221 : vector<1x32xf32>
    %223 = math.tanh %222 : vector<1x32xf32>
    %224 = arith.mulf %219, %223 : vector<1x32xf32>
    %225 = vector.extract_strided_slice %224 {offsets = [0, 16], sizes = [1, 16], strides = [1, 1]} : vector<1x32xf32> to vector<1x16xf32>
    %cst_25 = arith.constant dense<0.000000e+00> : vector<1x128xf32>
    %226 = tpu.matmul %224, %182, %cst_25 {dimension_numbers = #tpu.dot_dimension_numbers<[1], [0], [0], [1], [0, 0, 1, 1], [], []>} : vector<1x32xf32>, vector<32x128xf32>, vector<1x128xf32> -> vector<1x128xf32>
    %227 = arith.addf %226, %183 : vector<1x128xf32>
    %228 = arith.addf %227, %180 : vector<1x128xf32>
    %229 = arith.mulf %228, %184 : vector<1x128xf32>
    %230 = math.tanh %229 : vector<1x128xf32>
    %231 = arith.mulf %230, %184 : vector<1x128xf32>
    %232 = arith.addf %231, %186 : vector<1x128xf32>
    %233 = vector.extract_strided_slice %232 {offsets = [0, 0], sizes = [1, 32], strides = [1, 1]} : vector<1x128xf32> to vector<1x32xf32>
    %234 = vector.extract_strided_slice %232 {offsets = [0, 32], sizes = [1, 32], strides = [1, 1]} : vector<1x128xf32> to vector<1x32xf32>
    %235 = vector.extract_strided_slice %232 {offsets = [0, 64], sizes = [1, 32], strides = [1, 1]} : vector<1x128xf32> to vector<1x32xf32>
    %236 = vector.extract_strided_slice %232 {offsets = [0, 96], sizes = [1, 32], strides = [1, 1]} : vector<1x128xf32> to vector<1x32xf32>
    %237 = arith.mulf %234, %222 : vector<1x32xf32>
    %238 = arith.mulf %233, %235 : vector<1x32xf32>
    %239 = arith.addf %237, %238 : vector<1x32xf32>
    %240 = math.tanh %239 : vector<1x32xf32>
    %241 = arith.mulf %236, %240 : vector<1x32xf32>
    %242 = vector.extract_strided_slice %241 {offsets = [0, 16], sizes = [1, 16], strides = [1, 1]} : vector<1x32xf32> to vector<1x16xf32>
    %cst_26 = arith.constant dense<0.000000e+00> : vector<1x128xf32>
    %243 = tpu.matmul %241, %182, %cst_26 {dimension_numbers = #tpu.dot_dimension_numbers<[1], [0], [0], [1], [0, 0, 1, 1], [], []>} : vector<1x32xf32>, vector<32x128xf32>, vector<1x128xf32> -> vector<1x128xf32>
    %244 = arith.addf %243, %183 : vector<1x128xf32>
    %245 = arith.addf %244, %181 : vector<1x128xf32>
    %246 = arith.mulf %245, %184 : vector<1x128xf32>
    %247 = math.tanh %246 : vector<1x128xf32>
    %248 = arith.mulf %247, %184 : vector<1x128xf32>
    %249 = arith.addf %248, %186 : vector<1x128xf32>
    %250 = vector.extract_strided_slice %249 {offsets = [0, 0], sizes = [1, 32], strides = [1, 1]} : vector<1x128xf32> to vector<1x32xf32>
    %251 = vector.extract_strided_slice %249 {offsets = [0, 32], sizes = [1, 32], strides = [1, 1]} : vector<1x128xf32> to vector<1x32xf32>
    %252 = vector.extract_strided_slice %249 {offsets = [0, 64], sizes = [1, 32], strides = [1, 1]} : vector<1x128xf32> to vector<1x32xf32>
    %253 = vector.extract_strided_slice %249 {offsets = [0, 96], sizes = [1, 32], strides = [1, 1]} : vector<1x128xf32> to vector<1x32xf32>
    %254 = arith.mulf %251, %239 : vector<1x32xf32>
    %255 = arith.mulf %250, %252 : vector<1x32xf32>
    %256 = arith.addf %254, %255 : vector<1x32xf32>
    %257 = math.tanh %256 : vector<1x32xf32>
    %258 = arith.mulf %253, %257 : vector<1x32xf32>
    %259 = vector.extract_strided_slice %258 {offsets = [0, 16], sizes = [1, 16], strides = [1, 1]} : vector<1x32xf32> to vector<1x16xf32>
    %cst_27 = arith.constant dense<0.000000e+00> : vector<1x128xf32>
    %260 = tpu.matmul %258, %182, %cst_27 {dimension_numbers = #tpu.dot_dimension_numbers<[1], [0], [0], [1], [0, 0, 1, 1], [], []>} : vector<1x32xf32>, vector<32x128xf32>, vector<1x128xf32> -> vector<1x128xf32>
    %261 = arith.addf %260, %183 : vector<1x128xf32>
    %262 = arith.addf %261, %180 : vector<1x128xf32>
    %263 = arith.mulf %262, %184 : vector<1x128xf32>
    %264 = math.tanh %263 : vector<1x128xf32>
    %265 = arith.mulf %264, %184 : vector<1x128xf32>
    %266 = arith.addf %265, %186 : vector<1x128xf32>
    %267 = vector.extract_strided_slice %266 {offsets = [0, 0], sizes = [1, 32], strides = [1, 1]} : vector<1x128xf32> to vector<1x32xf32>
    %268 = vector.extract_strided_slice %266 {offsets = [0, 32], sizes = [1, 32], strides = [1, 1]} : vector<1x128xf32> to vector<1x32xf32>
    %269 = vector.extract_strided_slice %266 {offsets = [0, 64], sizes = [1, 32], strides = [1, 1]} : vector<1x128xf32> to vector<1x32xf32>
    %270 = vector.extract_strided_slice %266 {offsets = [0, 96], sizes = [1, 32], strides = [1, 1]} : vector<1x128xf32> to vector<1x32xf32>
    %271 = arith.mulf %268, %256 : vector<1x32xf32>
    %272 = arith.mulf %267, %269 : vector<1x32xf32>
    %273 = arith.addf %271, %272 : vector<1x32xf32>
    %274 = math.tanh %273 : vector<1x32xf32>
    %275 = arith.mulf %270, %274 : vector<1x32xf32>
    %276 = vector.extract_strided_slice %275 {offsets = [0, 16], sizes = [1, 16], strides = [1, 1]} : vector<1x32xf32> to vector<1x16xf32>
    %cst_28 = arith.constant dense<0.000000e+00> : vector<1x128xf32>
    %277 = tpu.matmul %275, %182, %cst_28 {dimension_numbers = #tpu.dot_dimension_numbers<[1], [0], [0], [1], [0, 0, 1, 1], [], []>} : vector<1x32xf32>, vector<32x128xf32>, vector<1x128xf32> -> vector<1x128xf32>
    %278 = arith.addf %277, %183 : vector<1x128xf32>
    %279 = arith.addf %278, %181 : vector<1x128xf32>
    %280 = arith.mulf %279, %184 : vector<1x128xf32>
    %281 = math.tanh %280 : vector<1x128xf32>
    %282 = arith.mulf %281, %184 : vector<1x128xf32>
    %283 = arith.addf %282, %186 : vector<1x128xf32>
    %284 = vector.extract_strided_slice %283 {offsets = [0, 0], sizes = [1, 32], strides = [1, 1]} : vector<1x128xf32> to vector<1x32xf32>
    %285 = vector.extract_strided_slice %283 {offsets = [0, 32], sizes = [1, 32], strides = [1, 1]} : vector<1x128xf32> to vector<1x32xf32>
    %286 = vector.extract_strided_slice %283 {offsets = [0, 64], sizes = [1, 32], strides = [1, 1]} : vector<1x128xf32> to vector<1x32xf32>
    %287 = vector.extract_strided_slice %283 {offsets = [0, 96], sizes = [1, 32], strides = [1, 1]} : vector<1x128xf32> to vector<1x32xf32>
    %288 = arith.mulf %285, %273 : vector<1x32xf32>
    %289 = arith.mulf %284, %286 : vector<1x32xf32>
    %290 = arith.addf %288, %289 : vector<1x32xf32>
    %291 = math.tanh %290 : vector<1x32xf32>
    %292 = arith.mulf %287, %291 : vector<1x32xf32>
    %293 = vector.extract_strided_slice %292 {offsets = [0, 16], sizes = [1, 16], strides = [1, 1]} : vector<1x32xf32> to vector<1x16xf32>
    %cst_29 = arith.constant dense<0.000000e+00> : vector<1x128xf32>
    %294 = tpu.matmul %292, %182, %cst_29 {dimension_numbers = #tpu.dot_dimension_numbers<[1], [0], [0], [1], [0, 0, 1, 1], [], []>} : vector<1x32xf32>, vector<32x128xf32>, vector<1x128xf32> -> vector<1x128xf32>
    %295 = arith.addf %294, %183 : vector<1x128xf32>
    %296 = arith.addf %295, %180 : vector<1x128xf32>
    %297 = arith.mulf %296, %184 : vector<1x128xf32>
    %298 = math.tanh %297 : vector<1x128xf32>
    %299 = arith.mulf %298, %184 : vector<1x128xf32>
    %300 = arith.addf %299, %186 : vector<1x128xf32>
    %301 = vector.extract_strided_slice %300 {offsets = [0, 0], sizes = [1, 32], strides = [1, 1]} : vector<1x128xf32> to vector<1x32xf32>
    %302 = vector.extract_strided_slice %300 {offsets = [0, 32], sizes = [1, 32], strides = [1, 1]} : vector<1x128xf32> to vector<1x32xf32>
    %303 = vector.extract_strided_slice %300 {offsets = [0, 64], sizes = [1, 32], strides = [1, 1]} : vector<1x128xf32> to vector<1x32xf32>
    %304 = vector.extract_strided_slice %300 {offsets = [0, 96], sizes = [1, 32], strides = [1, 1]} : vector<1x128xf32> to vector<1x32xf32>
    %305 = arith.mulf %302, %290 : vector<1x32xf32>
    %306 = arith.mulf %301, %303 : vector<1x32xf32>
    %307 = arith.addf %305, %306 : vector<1x32xf32>
    %308 = math.tanh %307 : vector<1x32xf32>
    %309 = arith.mulf %304, %308 : vector<1x32xf32>
    %310 = vector.extract_strided_slice %309 {offsets = [0, 16], sizes = [1, 16], strides = [1, 1]} : vector<1x32xf32> to vector<1x16xf32>
    %cst_30 = arith.constant dense<0.000000e+00> : vector<1x128xf32>
    %311 = tpu.matmul %309, %182, %cst_30 {dimension_numbers = #tpu.dot_dimension_numbers<[1], [0], [0], [1], [0, 0, 1, 1], [], []>} : vector<1x32xf32>, vector<32x128xf32>, vector<1x128xf32> -> vector<1x128xf32>
    %312 = arith.addf %311, %183 : vector<1x128xf32>
    %313 = arith.addf %312, %181 : vector<1x128xf32>
    %314 = arith.mulf %313, %184 : vector<1x128xf32>
    %315 = math.tanh %314 : vector<1x128xf32>
    %316 = arith.mulf %315, %184 : vector<1x128xf32>
    %317 = arith.addf %316, %186 : vector<1x128xf32>
    %318 = vector.extract_strided_slice %317 {offsets = [0, 0], sizes = [1, 32], strides = [1, 1]} : vector<1x128xf32> to vector<1x32xf32>
    %319 = vector.extract_strided_slice %317 {offsets = [0, 32], sizes = [1, 32], strides = [1, 1]} : vector<1x128xf32> to vector<1x32xf32>
    %320 = vector.extract_strided_slice %317 {offsets = [0, 64], sizes = [1, 32], strides = [1, 1]} : vector<1x128xf32> to vector<1x32xf32>
    %321 = vector.extract_strided_slice %317 {offsets = [0, 96], sizes = [1, 32], strides = [1, 1]} : vector<1x128xf32> to vector<1x32xf32>
    %322 = arith.mulf %319, %307 : vector<1x32xf32>
    %323 = arith.mulf %318, %320 : vector<1x32xf32>
    %324 = arith.addf %322, %323 : vector<1x32xf32>
    %325 = math.tanh %324 : vector<1x32xf32>
    %326 = arith.mulf %321, %325 : vector<1x32xf32>
    %327 = vector.extract_strided_slice %326 {offsets = [0, 16], sizes = [1, 16], strides = [1, 1]} : vector<1x32xf32> to vector<1x16xf32>
    %cst_31 = arith.constant dense<0.000000e+00> : vector<1x128xf32>
    %328 = tpu.matmul %326, %182, %cst_31 {dimension_numbers = #tpu.dot_dimension_numbers<[1], [0], [0], [1], [0, 0, 1, 1], [], []>} : vector<1x32xf32>, vector<32x128xf32>, vector<1x128xf32> -> vector<1x128xf32>
    %329 = arith.addf %328, %183 : vector<1x128xf32>
    %330 = arith.addf %329, %180 : vector<1x128xf32>
    %331 = arith.mulf %330, %184 : vector<1x128xf32>
    %332 = math.tanh %331 : vector<1x128xf32>
    %333 = arith.mulf %332, %184 : vector<1x128xf32>
    %334 = arith.addf %333, %186 : vector<1x128xf32>
    %335 = vector.extract_strided_slice %334 {offsets = [0, 0], sizes = [1, 32], strides = [1, 1]} : vector<1x128xf32> to vector<1x32xf32>
    %336 = vector.extract_strided_slice %334 {offsets = [0, 32], sizes = [1, 32], strides = [1, 1]} : vector<1x128xf32> to vector<1x32xf32>
    %337 = vector.extract_strided_slice %334 {offsets = [0, 64], sizes = [1, 32], strides = [1, 1]} : vector<1x128xf32> to vector<1x32xf32>
    %338 = vector.extract_strided_slice %334 {offsets = [0, 96], sizes = [1, 32], strides = [1, 1]} : vector<1x128xf32> to vector<1x32xf32>
    %339 = arith.mulf %336, %324 : vector<1x32xf32>
    %340 = arith.mulf %335, %337 : vector<1x32xf32>
    %341 = arith.addf %339, %340 : vector<1x32xf32>
    %342 = math.tanh %341 : vector<1x32xf32>
    %343 = arith.mulf %338, %342 : vector<1x32xf32>
    %344 = vector.extract_strided_slice %343 {offsets = [0, 16], sizes = [1, 16], strides = [1, 1]} : vector<1x32xf32> to vector<1x16xf32>
    %cst_32 = arith.constant dense<0.000000e+00> : vector<1x128xf32>
    %345 = tpu.matmul %343, %182, %cst_32 {dimension_numbers = #tpu.dot_dimension_numbers<[1], [0], [0], [1], [0, 0, 1, 1], [], []>} : vector<1x32xf32>, vector<32x128xf32>, vector<1x128xf32> -> vector<1x128xf32>
    %346 = arith.addf %345, %183 : vector<1x128xf32>
    %347 = arith.addf %346, %181 : vector<1x128xf32>
    %348 = arith.mulf %347, %184 : vector<1x128xf32>
    %349 = math.tanh %348 : vector<1x128xf32>
    %350 = arith.mulf %349, %184 : vector<1x128xf32>
    %351 = arith.addf %350, %186 : vector<1x128xf32>
    %352 = vector.extract_strided_slice %351 {offsets = [0, 0], sizes = [1, 32], strides = [1, 1]} : vector<1x128xf32> to vector<1x32xf32>
    %353 = vector.extract_strided_slice %351 {offsets = [0, 32], sizes = [1, 32], strides = [1, 1]} : vector<1x128xf32> to vector<1x32xf32>
    %354 = vector.extract_strided_slice %351 {offsets = [0, 64], sizes = [1, 32], strides = [1, 1]} : vector<1x128xf32> to vector<1x32xf32>
    %355 = vector.extract_strided_slice %351 {offsets = [0, 96], sizes = [1, 32], strides = [1, 1]} : vector<1x128xf32> to vector<1x32xf32>
    %356 = arith.mulf %353, %341 : vector<1x32xf32>
    %357 = arith.mulf %352, %354 : vector<1x32xf32>
    %358 = arith.addf %356, %357 : vector<1x32xf32>
    %359 = math.tanh %358 : vector<1x32xf32>
    %360 = arith.mulf %355, %359 : vector<1x32xf32>
    %361 = vector.extract_strided_slice %360 {offsets = [0, 16], sizes = [1, 16], strides = [1, 1]} : vector<1x32xf32> to vector<1x16xf32>
    %cst_33 = arith.constant dense<0.000000e+00> : vector<1x128xf32>
    %362 = tpu.matmul %360, %182, %cst_33 {dimension_numbers = #tpu.dot_dimension_numbers<[1], [0], [0], [1], [0, 0, 1, 1], [], []>} : vector<1x32xf32>, vector<32x128xf32>, vector<1x128xf32> -> vector<1x128xf32>
    %363 = arith.addf %362, %183 : vector<1x128xf32>
    %364 = arith.addf %363, %180 : vector<1x128xf32>
    %365 = arith.mulf %364, %184 : vector<1x128xf32>
    %366 = math.tanh %365 : vector<1x128xf32>
    %367 = arith.mulf %366, %184 : vector<1x128xf32>
    %368 = arith.addf %367, %186 : vector<1x128xf32>
    %369 = vector.extract_strided_slice %368 {offsets = [0, 0], sizes = [1, 32], strides = [1, 1]} : vector<1x128xf32> to vector<1x32xf32>
    %370 = vector.extract_strided_slice %368 {offsets = [0, 32], sizes = [1, 32], strides = [1, 1]} : vector<1x128xf32> to vector<1x32xf32>
    %371 = vector.extract_strided_slice %368 {offsets = [0, 64], sizes = [1, 32], strides = [1, 1]} : vector<1x128xf32> to vector<1x32xf32>
    %372 = vector.extract_strided_slice %368 {offsets = [0, 96], sizes = [1, 32], strides = [1, 1]} : vector<1x128xf32> to vector<1x32xf32>
    %373 = arith.mulf %370, %358 : vector<1x32xf32>
    %374 = arith.mulf %369, %371 : vector<1x32xf32>
    %375 = arith.addf %373, %374 : vector<1x32xf32>
    %376 = math.tanh %375 : vector<1x32xf32>
    %377 = arith.mulf %372, %376 : vector<1x32xf32>
    %378 = vector.extract_strided_slice %377 {offsets = [0, 16], sizes = [1, 16], strides = [1, 1]} : vector<1x32xf32> to vector<1x16xf32>
    %cst_34 = arith.constant dense<0.000000e+00> : vector<1x128xf32>
    %379 = tpu.matmul %377, %182, %cst_34 {dimension_numbers = #tpu.dot_dimension_numbers<[1], [0], [0], [1], [0, 0, 1, 1], [], []>} : vector<1x32xf32>, vector<32x128xf32>, vector<1x128xf32> -> vector<1x128xf32>
    %380 = arith.addf %379, %183 : vector<1x128xf32>
    %381 = arith.addf %380, %181 : vector<1x128xf32>
    %382 = arith.mulf %381, %184 : vector<1x128xf32>
    %383 = math.tanh %382 : vector<1x128xf32>
    %384 = arith.mulf %383, %184 : vector<1x128xf32>
    %385 = arith.addf %384, %186 : vector<1x128xf32>
    %386 = vector.extract_strided_slice %385 {offsets = [0, 0], sizes = [1, 32], strides = [1, 1]} : vector<1x128xf32> to vector<1x32xf32>
    %387 = vector.extract_strided_slice %385 {offsets = [0, 32], sizes = [1, 32], strides = [1, 1]} : vector<1x128xf32> to vector<1x32xf32>
    %388 = vector.extract_strided_slice %385 {offsets = [0, 64], sizes = [1, 32], strides = [1, 1]} : vector<1x128xf32> to vector<1x32xf32>
    %389 = vector.extract_strided_slice %385 {offsets = [0, 96], sizes = [1, 32], strides = [1, 1]} : vector<1x128xf32> to vector<1x32xf32>
    %390 = arith.mulf %387, %375 : vector<1x32xf32>
    %391 = arith.mulf %386, %388 : vector<1x32xf32>
    %392 = arith.addf %390, %391 : vector<1x32xf32>
    %393 = math.tanh %392 : vector<1x32xf32>
    %394 = arith.mulf %389, %393 : vector<1x32xf32>
    %395 = vector.extract_strided_slice %394 {offsets = [0, 16], sizes = [1, 16], strides = [1, 1]} : vector<1x32xf32> to vector<1x16xf32>
    %cst_35 = arith.constant dense<0.000000e+00> : vector<1x128xf32>
    %396 = tpu.matmul %394, %182, %cst_35 {dimension_numbers = #tpu.dot_dimension_numbers<[1], [0], [0], [1], [0, 0, 1, 1], [], []>} : vector<1x32xf32>, vector<32x128xf32>, vector<1x128xf32> -> vector<1x128xf32>
    %397 = arith.addf %396, %183 : vector<1x128xf32>
    %398 = arith.addf %397, %180 : vector<1x128xf32>
    %399 = arith.mulf %398, %184 : vector<1x128xf32>
    %400 = math.tanh %399 : vector<1x128xf32>
    %401 = arith.mulf %400, %184 : vector<1x128xf32>
    %402 = arith.addf %401, %186 : vector<1x128xf32>
    %403 = vector.extract_strided_slice %402 {offsets = [0, 0], sizes = [1, 32], strides = [1, 1]} : vector<1x128xf32> to vector<1x32xf32>
    %404 = vector.extract_strided_slice %402 {offsets = [0, 32], sizes = [1, 32], strides = [1, 1]} : vector<1x128xf32> to vector<1x32xf32>
    %405 = vector.extract_strided_slice %402 {offsets = [0, 64], sizes = [1, 32], strides = [1, 1]} : vector<1x128xf32> to vector<1x32xf32>
    %406 = vector.extract_strided_slice %402 {offsets = [0, 96], sizes = [1, 32], strides = [1, 1]} : vector<1x128xf32> to vector<1x32xf32>
    %407 = arith.mulf %404, %392 : vector<1x32xf32>
    %408 = arith.mulf %403, %405 : vector<1x32xf32>
    %409 = arith.addf %407, %408 : vector<1x32xf32>
    %410 = math.tanh %409 : vector<1x32xf32>
    %411 = arith.mulf %406, %410 : vector<1x32xf32>
    %412 = vector.extract_strided_slice %411 {offsets = [0, 16], sizes = [1, 16], strides = [1, 1]} : vector<1x32xf32> to vector<1x16xf32>
    %cst_36 = arith.constant dense<0.000000e+00> : vector<1x128xf32>
    %413 = tpu.matmul %411, %182, %cst_36 {dimension_numbers = #tpu.dot_dimension_numbers<[1], [0], [0], [1], [0, 0, 1, 1], [], []>} : vector<1x32xf32>, vector<32x128xf32>, vector<1x128xf32> -> vector<1x128xf32>
    %414 = arith.addf %413, %183 : vector<1x128xf32>
    %415 = arith.addf %414, %181 : vector<1x128xf32>
    %416 = arith.mulf %415, %184 : vector<1x128xf32>
    %417 = math.tanh %416 : vector<1x128xf32>
    %418 = arith.mulf %417, %184 : vector<1x128xf32>
    %419 = arith.addf %418, %186 : vector<1x128xf32>
    %420 = vector.extract_strided_slice %419 {offsets = [0, 0], sizes = [1, 32], strides = [1, 1]} : vector<1x128xf32> to vector<1x32xf32>
    %421 = vector.extract_strided_slice %419 {offsets = [0, 32], sizes = [1, 32], strides = [1, 1]} : vector<1x128xf32> to vector<1x32xf32>
    %422 = vector.extract_strided_slice %419 {offsets = [0, 64], sizes = [1, 32], strides = [1, 1]} : vector<1x128xf32> to vector<1x32xf32>
    %423 = vector.extract_strided_slice %419 {offsets = [0, 96], sizes = [1, 32], strides = [1, 1]} : vector<1x128xf32> to vector<1x32xf32>
    %424 = arith.mulf %421, %409 : vector<1x32xf32>
    %425 = arith.mulf %420, %422 : vector<1x32xf32>
    %426 = arith.addf %424, %425 : vector<1x32xf32>
    %427 = math.tanh %426 : vector<1x32xf32>
    %428 = arith.mulf %423, %427 : vector<1x32xf32>
    %429 = vector.extract_strided_slice %428 {offsets = [0, 16], sizes = [1, 16], strides = [1, 1]} : vector<1x32xf32> to vector<1x16xf32>
    %cst_37 = arith.constant dense<0.000000e+00> : vector<1x128xf32>
    %430 = tpu.matmul %428, %182, %cst_37 {dimension_numbers = #tpu.dot_dimension_numbers<[1], [0], [0], [1], [0, 0, 1, 1], [], []>} : vector<1x32xf32>, vector<32x128xf32>, vector<1x128xf32> -> vector<1x128xf32>
    %431 = arith.addf %430, %183 : vector<1x128xf32>
    %432 = arith.addf %431, %180 : vector<1x128xf32>
    %433 = arith.mulf %432, %184 : vector<1x128xf32>
    %434 = math.tanh %433 : vector<1x128xf32>
    %435 = arith.mulf %434, %184 : vector<1x128xf32>
    %436 = arith.addf %435, %186 : vector<1x128xf32>
    %437 = vector.extract_strided_slice %436 {offsets = [0, 0], sizes = [1, 32], strides = [1, 1]} : vector<1x128xf32> to vector<1x32xf32>
    %438 = vector.extract_strided_slice %436 {offsets = [0, 32], sizes = [1, 32], strides = [1, 1]} : vector<1x128xf32> to vector<1x32xf32>
    %439 = vector.extract_strided_slice %436 {offsets = [0, 64], sizes = [1, 32], strides = [1, 1]} : vector<1x128xf32> to vector<1x32xf32>
    %440 = vector.extract_strided_slice %436 {offsets = [0, 96], sizes = [1, 32], strides = [1, 1]} : vector<1x128xf32> to vector<1x32xf32>
    %441 = arith.mulf %438, %426 : vector<1x32xf32>
    %442 = arith.mulf %437, %439 : vector<1x32xf32>
    %443 = arith.addf %441, %442 : vector<1x32xf32>
    %444 = math.tanh %443 : vector<1x32xf32>
    %445 = arith.mulf %440, %444 : vector<1x32xf32>
    %446 = vector.extract_strided_slice %445 {offsets = [0, 16], sizes = [1, 16], strides = [1, 1]} : vector<1x32xf32> to vector<1x16xf32>
    %cst_38 = arith.constant dense<0.000000e+00> : vector<1x128xf32>
    %447 = tpu.matmul %445, %182, %cst_38 {dimension_numbers = #tpu.dot_dimension_numbers<[1], [0], [0], [1], [0, 0, 1, 1], [], []>} : vector<1x32xf32>, vector<32x128xf32>, vector<1x128xf32> -> vector<1x128xf32>
    %448 = arith.addf %447, %183 : vector<1x128xf32>
    %449 = arith.addf %448, %181 : vector<1x128xf32>
    %450 = arith.mulf %449, %184 : vector<1x128xf32>
    %451 = math.tanh %450 : vector<1x128xf32>
    %452 = arith.mulf %451, %184 : vector<1x128xf32>
    %453 = arith.addf %452, %186 : vector<1x128xf32>
    %454 = vector.extract_strided_slice %453 {offsets = [0, 0], sizes = [1, 32], strides = [1, 1]} : vector<1x128xf32> to vector<1x32xf32>
    %455 = vector.extract_strided_slice %453 {offsets = [0, 32], sizes = [1, 32], strides = [1, 1]} : vector<1x128xf32> to vector<1x32xf32>
    %456 = vector.extract_strided_slice %453 {offsets = [0, 64], sizes = [1, 32], strides = [1, 1]} : vector<1x128xf32> to vector<1x32xf32>
    %457 = vector.extract_strided_slice %453 {offsets = [0, 96], sizes = [1, 32], strides = [1, 1]} : vector<1x128xf32> to vector<1x32xf32>
    %458 = arith.mulf %455, %443 : vector<1x32xf32>
    %459 = arith.mulf %454, %456 : vector<1x32xf32>
    %460 = arith.addf %458, %459 : vector<1x32xf32>
    %461 = math.tanh %460 : vector<1x32xf32>
    %462 = arith.mulf %457, %461 : vector<1x32xf32>
    %463 = vector.extract_strided_slice %462 {offsets = [0, 16], sizes = [1, 16], strides = [1, 1]} : vector<1x32xf32> to vector<1x16xf32>
    %cst_39 = arith.constant dense<0.000000e+00> : vector<1x128xf32>
    %464 = tpu.matmul %462, %182, %cst_39 {dimension_numbers = #tpu.dot_dimension_numbers<[1], [0], [0], [1], [0, 0, 1, 1], [], []>} : vector<1x32xf32>, vector<32x128xf32>, vector<1x128xf32> -> vector<1x128xf32>
    %465 = arith.addf %464, %183 : vector<1x128xf32>
    %466 = arith.mulf %465, %184 : vector<1x128xf32>
    %467 = math.tanh %466 : vector<1x128xf32>
    %468 = arith.mulf %467, %184 : vector<1x128xf32>
    %469 = arith.addf %468, %186 : vector<1x128xf32>
    %470 = vector.extract_strided_slice %469 {offsets = [0, 0], sizes = [1, 32], strides = [1, 1]} : vector<1x128xf32> to vector<1x32xf32>
    %471 = vector.extract_strided_slice %469 {offsets = [0, 32], sizes = [1, 32], strides = [1, 1]} : vector<1x128xf32> to vector<1x32xf32>
    %472 = vector.extract_strided_slice %469 {offsets = [0, 64], sizes = [1, 32], strides = [1, 1]} : vector<1x128xf32> to vector<1x32xf32>
    %473 = vector.extract_strided_slice %469 {offsets = [0, 96], sizes = [1, 32], strides = [1, 1]} : vector<1x128xf32> to vector<1x32xf32>
    %474 = arith.mulf %471, %460 : vector<1x32xf32>
    %475 = arith.mulf %470, %472 : vector<1x32xf32>
    %476 = arith.addf %474, %475 : vector<1x32xf32>
    %477 = math.tanh %476 : vector<1x32xf32>
    %478 = arith.mulf %473, %477 : vector<1x32xf32>
    %479 = vector.extract_strided_slice %478 {offsets = [0, 16], sizes = [1, 16], strides = [1, 1]} : vector<1x32xf32> to vector<1x16xf32>
    %480 = tpu.concatenate %225, %242, %259, %276, %293, %310, %327, %344, %361, %378, %395, %412, %429, %446, %463, %479 in 0 : vector<1x16xf32>, vector<1x16xf32>, vector<1x16xf32>, vector<1x16xf32>, vector<1x16xf32>, vector<1x16xf32>, vector<1x16xf32>, vector<1x16xf32>, vector<1x16xf32>, vector<1x16xf32>, vector<1x16xf32>, vector<1x16xf32>, vector<1x16xf32>, vector<1x16xf32>, vector<1x16xf32>, vector<1x16xf32> -> vector<16x16xf32>
    %c208 = arith.constant 208 : index
    %c0_40 = arith.constant 0 : index
    %481 = vector.load %arg0[%c208, %c0_40] : memref<232x256xf32, #tpu.memory_space<vmem>>, vector<16x128xf32>
    %c230 = arith.constant 230 : index
    %c0_41 = arith.constant 0 : index
    %482 = vector.load %arg0[%c230, %c0_41] : memref<232x256xf32, #tpu.memory_space<vmem>>, vector<1x128xf32>
    %cst_42 = arith.constant dense<0.000000e+00> : vector<16x128xf32>
    %483 = tpu.matmul %480, %481, %cst_42 {dimension_numbers = #tpu.dot_dimension_numbers<[1], [0], [0], [1], [0, 0, 1, 1], [], []>} : vector<16x16xf32>, vector<16x128xf32>, vector<16x128xf32> -> vector<16x128xf32>
    %484 = vector.broadcast %482 : vector<1x128xf32> to vector<16x128xf32>
    %485 = arith.addf %483, %484 : vector<16x128xf32>
    %c0_43 = arith.constant 0 : index
    %c0_44 = arith.constant 0 : index
    %486 = vector.load %arg1[%c0_43, %c0_44] : memref<16x128xf32, #tpu.memory_space<vmem>>, vector<16x128xf32>
    tpu.vector_store %arg1[%c0_43, %c0_44], %485 {strides = array<i32>} : memref<16x128xf32, #tpu.memory_space<vmem>>, vector<16x128xf32>,
    return
  }
}

</mosaic_0001>

<bundles_post_ra>
// kernel: tpu_custom_call.1
= control target key start
LH: loop header
LB: loop body
LE: loop exit
PB: predicated region body
PF: predicated region fallthrough
CT: control target
= control target key end

     0   :  { %6 = vsyncpa [#allocation3], 0  ;;  %s2536_s0 = inlined_call_operand.hbm [shape: f32[232,256], index: 0, kind: input, shape index: {}]   ;;  %s2537_s1 = inlined_call_operand.hbm [shape: f32[16,128], index: 1, kind: output, shape index: {}]  }
   0x1   :  { %7 = vsyncpa [#allocation4], 0  ;;  %s12_s8 = sshll.u32 %s2536_s0, 4  ;;  %s1894_s9 = smov [#allocation2]   ;;  %s13_s8 = int_to_ptr.hbm [resolvable:$true] %s12_s8 }
   0x2   :  { %s14_s10 = sshll.u32 %s1894_s9, 4  ;;  %s1895_s11 = smov 256   ;;  %s15_s10 = int_to_ptr.vmem [resolvable:$true] %s14_s10 }
   0x3   :  { %s1896_s12 = smov 16  }
   0x4   :  { %20 = dma.hbm_to_vmem [thread:$0]  %s13_s8, 7424, %s15_s10, [#allocation3], %s1895_s11, %s1895_s11, %s1896_s12  }
   0x5   :  { %1890 = dma.done.wait [#allocation3], 7424  }
   0x6   :  { %1891 = vsyncadd [#allocation3], 4294959872  ;;  %v35_v0 = vld [vmem:[#allocation2 + $0x90] sm:$0xff]  ;;  %v36_v1 = vld [vmem:[#allocation2 + $0x98] sm:$0xff]  ;;  %vm44_vm0 = vcmask 130048   ;;  %v202_v28 = vlaneseq  ;;  %s1897_s0 = smov 64  }
   0x7   :  { %v33_v2 = vld [vmem:[#allocation2 + $0x80] sm:$0xff]  ;;  %83 = vmatpush.msra.mxu0 %v35_v0  ;;  %124 = vmatpush.msra.mxu1 %v36_v1  ;;  %v34_v3 = vld [vmem:[#allocation2 + $0x88] sm:$0xff]  ;;  %v1898_v33 = vmov 0.0   ;;  %v1957_v35 = vld [vmem:[#allocation2 + $0x110] sm:$0xff]  ;;  %vm216_vm2 = vcmask 523264   ;;  %s1899_s13 = smov 32  }
   0x8   :  { %v25_v4 = vld [vmem:[#allocation2] sm:$0xff]  ;;  %v1951_v32 = vand.u32 127, %v202_v28  ;;  %v1959_v36 = vld [vmem:[#allocation2 + $0x118] sm:$0xff]  ;;  %227 = vmatpush.msra.mxu2 %v1957_v35  ;;  %v1965_v38 = vld [vmem:[#allocation2 + $0x108] sm:$0xff]  ;;  %vm732_vm3 = vcmask 261120   ;;  %s1900_s14 = smov 96  }
   0x9   :  { %84 = vmatpush.msra.mxu0 %v33_v2  ;;  %125 = vmatpush.msra.mxu1 %v34_v3  ;;  %v38_v5 = vld [vmem:[#allocation2 + $0x1c0] ss:$8 sm:$0x3]  ;;  %v168_v6 = vld [vmem:[#allocation2 + $0x1c1] ss:$8 sm:$0x3] }
   0xa   :  { %1657 = vmatmul.msk.f32.vlgmr.msra.gmra.mxu0 %vm44_vm0, %v25_v4  ;;  %1665 = vmatmul.msk.f32.vlgmr.msra.gmra.mxu1 %vm44_vm0, %v25_v4  ;;  %v1920_v7 = vperm.slane %v38_v5, 0  ;;  %v1922_v8 = vperm.slane %v38_v5, 1  ;;  %v170_v9 = vld [vmem:[#allocation2 + $0x1c2] ss:$8 sm:$0x3]  ;;  %v1924_v10 = vperm.slane %v168_v6, 0 }
   0xb   :  { %v1926_v11 = vperm.slane %v168_v6, 1  ;;  %v1929_v15 = vperm.slane %v170_v9, 0  ;;  %v1932_v17 = vperm.slane %v170_v9, 1  ;;  %vm204_vm1 = vcmp.lt.s32.totalorder %v1951_v32, 32  ;;  %v1961_v37 = vld [vmem:[#allocation2 + $0x100] sm:$0xff]  ;;  %247 = vmatpush.msra.mxu3 %v1959_v36  ;;  %v1967_v39 = vld [vmem:[#allocation2 + $0xf0] sm:$0xff]  ;;  %483 = vmatpush.msrb.mxu0 %v1957_v35 }
   0xc   :  { %v1673_v34 = vsel %vm204_vm1, 1.0, %v1898_v33  ;;  %v1969_v40 = vld [vmem:[#allocation2 + $0xf8] sm:$0xff]  ;;  %503 = vmatpush.msrb.mxu1 %v1959_v36  ;;  %228 = vmatpush.msra.mxu2 %v1961_v37  ;;  %v1975_v41 = vld [vmem:[#allocation2 + $0xe0] sm:$0xff]  ;;  %v1977_v42 = vld [vmem:[#allocation2 + $0xe8] sm:$0xff]  ;;  %vm784_vm4 = vcmp.lt.s32.totalorder %v1951_v32, 16  ;;  %vm1579_vm5 = vcmask 1040384  }
   0xd   :  { %v1939_v22 = vsub.f32 1.0, %v1929_v15  ;;  %v1942_v24 = vsub.f32 1.0, %v1932_v17  ;;  %248 = vmatpush.msra.mxu3 %v1965_v38  ;;  %484 = vmatpush.msrb.mxu0 %v1961_v37  ;;  %v1983_v43 = vld [vmem:[#allocation2 + $0xd0] sm:$0xff]  ;;  %v1985_v44 = vld [vmem:[#allocation2 + $0xd8] sm:$0xff]  ;;  %v1991_v45 = vld [vmem:[#allocation2 + $0xc0] sm:$0xff]  ;;  %vm1581_vm6 = vcmask 1041408  }
   0xe   :  { %504 = vmatpush.msrb.mxu1 %v1965_v38  ;;  %229 = vmatpush.msra.mxu2 %v1967_v39  ;;  %v1993_v46 = vld [vmem:[#allocation2 + $0xc8] sm:$0xff]  ;;  %v1999_v47 = vld [vmem:[#allocation2 + $0xb0] sm:$0xff]  ;;  %v2001_v48 = vld [vmem:[#allocation2 + $0xb8] sm:$0xff]  ;;  %vm1583_vm7 = vcmask 1042432   ;;  %vm1585_vm8 = vcmask 1043456   ;;  %vm1587_vm9 = vcmask 1044480  }
   0xf   :  { %249 = vmatpush.msra.mxu3 %v1969_v40  ;;  %485 = vmatpush.msrb.mxu0 %v1967_v39  ;;  %v2007_v49 = vld [vmem:[#allocation2 + $0xa0] sm:$0xff]  ;;  %v2009_v50 = vld [vmem:[#allocation2 + $0xa8] sm:$0xff]  ;;  %v26_v58 = vld [vmem:[#allocation2 + $0x10] sm:$0xff]  ;;  %vm1589_vm10 = vcmask 1045504   ;;  %vm1591_vm11 = vcmask 1046528   ;;  %s1901_s15 = smov [#allocation5]  }
  0x10   :  { %505 = vmatpush.msrb.mxu1 %v1969_v40  ;;  %230 = vmatpush.msra.mxu2 %v1975_v41  ;;  %v2277_v32 = vld [vmem:[#allocation2 + $0x190] sm:$0xff]  ;;  %s1642_s16 = sshll.u32 %s1901_s15, 4  ;;  %s1644_s19 = sshll.u32 %s2537_s1, 4  ;;  %s1643_s16 = int_to_ptr.vmem [resolvable:$true] %s1642_s16  ;;  %s1645_s19 = int_to_ptr.hbm [resolvable:$true] %s1644_s19 }
  0x11   :  { %250 = vmatpush.msra.mxu3 %v1977_v42  ;;  %486 = vmatpush.msrb.mxu0 %v1975_v41  ;;  %s1902_s20 = smov 128   ;;  %s1903_s21 = smov 8  }
  0x12   :  { %506 = vmatpush.msrb.mxu1 %v1977_v42  ;;  %231 = vmatpush.msra.mxu2 %v1983_v43 }
  0x13   :  { %251 = vmatpush.msra.mxu3 %v1985_v44  ;;  %487 = vmatpush.msrb.mxu0 %v1983_v43 }
  0x14   :  { %507 = vmatpush.msrb.mxu1 %v1985_v44  ;;  %232 = vmatpush.msra.mxu2 %v1991_v45 }
  0x15   :  { %252 = vmatpush.msra.mxu3 %v1993_v46  ;;  %488 = vmatpush.msrb.mxu0 %v1991_v45 }
  0x16   :  { %508 = vmatpush.msrb.mxu1 %v1993_v46  ;;  %233 = vmatpush.msra.mxu2 %v1999_v47 }
  0x17   :  { %253 = vmatpush.msra.mxu3 %v2001_v48  ;;  %489 = vmatpush.msrb.mxu0 %v1999_v47 }
  0x18   :  { %509 = vmatpush.msrb.mxu1 %v2001_v48  ;;  %234 = vmatpush.msra.mxu2 %v2007_v49 }
  0x19   :  { %254 = vmatpush.msra.mxu3 %v2009_v50  ;;  %490 = vmatpush.msrb.mxu0 %v2007_v49 }
  0x1a   :  { %291 = vmatpush.msrb.mxu2 %v1957_v35  ;;  %510 = vmatpush.msrb.mxu1 %v2009_v50 }
  0x1b   :  { %311 = vmatpush.msrb.mxu3 %v1959_v36  ;;  %611 = vmatpush.msra.mxu0 %v1957_v35 }
  0x1c   :  { %292 = vmatpush.msrb.mxu2 %v1961_v37  ;;  %631 = vmatpush.msra.mxu1 %v1959_v36 }
  0x1d   :  { %312 = vmatpush.msrb.mxu3 %v1965_v38  ;;  %612 = vmatpush.msra.mxu0 %v1961_v37 }
  0x1e   :  { %293 = vmatpush.msrb.mxu2 %v1967_v39  ;;  %632 = vmatpush.msra.mxu1 %v1965_v38 }
  0x1f   :  { %313 = vmatpush.msrb.mxu3 %v1969_v40  ;;  %613 = vmatpush.msra.mxu0 %v1967_v39 }
  0x20   :  { %294 = vmatpush.msrb.mxu2 %v1975_v41  ;;  %633 = vmatpush.msra.mxu1 %v1969_v40 }
  0x21   :  { %314 = vmatpush.msrb.mxu3 %v1977_v42  ;;  %614 = vmatpush.msra.mxu0 %v1975_v41 }
  0x22   :  { %295 = vmatpush.msrb.mxu2 %v1983_v43  ;;  %634 = vmatpush.msra.mxu1 %v1977_v42 }
  0x23   :  { %315 = vmatpush.msrb.mxu3 %v1985_v44  ;;  %615 = vmatpush.msra.mxu0 %v1983_v43 }
  0x24   :  { %296 = vmatpush.msrb.mxu2 %v1991_v45  ;;  %635 = vmatpush.msra.mxu1 %v1985_v44 }
  0x25   :  { %316 = vmatpush.msrb.mxu3 %v1993_v46  ;;  %616 = vmatpush.msra.mxu0 %v1991_v45 }
  0x26   :  { %297 = vmatpush.msrb.mxu2 %v1999_v47  ;;  %636 = vmatpush.msra.mxu1 %v1993_v46 }
  0x27   :  { %317 = vmatpush.msrb.mxu3 %v2001_v48  ;;  %617 = vmatpush.msra.mxu0 %v1999_v47 }
  0x28   :  { %298 = vmatpush.msrb.mxu2 %v2007_v49  ;;  %637 = vmatpush.msra.mxu1 %v2001_v48 }
  0x29   :  { %318 = vmatpush.msrb.mxu3 %v2009_v50  ;;  %618 = vmatpush.msra.mxu0 %v2007_v49 }
  0x2a   :  { %638 = vmatpush.msra.mxu1 %v2009_v50  ;;  %1658 = vmatmul.msk.f32.gmra.mxu0 %vm44_vm0, %v26_v58 }
  0x2b   :  { %1666 = vmatmul.msk.f32.gmra.mxu1 %vm44_vm0, %v26_v58 }
  0x87   :  { %v86_v12 = vpop.f32.mrf.mxu0  ;;  %v127_v13 = vpop.f32.mrf.mxu1 }
  0x88   :  { %v87_v14 = vadd.f32 %v86_v12, %v1920_v7  ;;  %v128_v16 = vadd.f32 %v127_v13, %v1922_v8 }
  0x8a   :  { %v183_v18 = vadd.f32 %v1924_v10, %v87_v14  ;;  %v184_v19 = vadd.f32 %v1926_v11, %v128_v16 }
  0x8c   :  { %v185_v20 = vmul.f32 %v183_v18, %v1929_v15  ;;  %v186_v21 = vmul.f32 %v184_v19, %v1932_v17 }
  0x8e   :  { %1720 = vtanh.f32 %v185_v20 }
  0x8f   :  { %1722 = vtanh.f32 %v186_v21 }
  0x94   :  { %v1721_v23 = vpop.eup %1720 }
  0x95   :  { %v1723_v25 = vpop.eup %1722  ;;  %v189_v26 = vmul.f32 %v1721_v23, %v1929_v15 }
  0x96   :  { %v190_v27 = vmul.f32 %v1723_v25, %v1932_v17 }
  0x97   :  { %v191_v29 = vadd.f32 %v189_v26, %v1939_v22 }
  0x98   :  { %v1948_v30 = vadd.f32 %v190_v27, %v1942_v24 }
  0x99   :  { %v193_v51 = vmul.f32 0.0, %v191_v29 }
  0x9a   :  { %v194_v31 = vmul.f32 %v1948_v30, %v191_v29  ;;  %v27_v29 = vld [vmem:[#allocation2 + $0x20] sm:$0xff] }
  0x9b   :  { %1659 = vmatmul.msk.f32.gmra.mxu0 %vm44_vm0, %v27_v29  ;;  %1667 = vmatmul.msk.f32.gmra.mxu1 %vm44_vm0, %v27_v29 }
  0x9c   :  { %196 = vrot.lane.b32.xlu0 %v194_v31, %s1897_s0 }
  0xa4   :  { %208 = vrot.lane.b32.xlu0 %v1673_v34, %s1897_s0 }
  0xa7   :  { %v89_v60 = vpop.f32.mrf.mxu0 }
  0xa8   :  { %v130_v61 = vpop.f32.mrf.mxu1  ;;  %v90_v62 = vadd.f32 %v89_v60, %v1920_v7 }
  0xa9   :  { %v131_v63 = vadd.f32 %v130_v61, %v1922_v8 }
 0x10e   :  { %v197_v52 = vpop.permute.xlu0 %196 }
 0x10f   :  { %v2025_v53 = vadd.f32 %v197_v52, %v193_v51 }
 0x111   :  { %1724 = vtanh.f32 %v2025_v53 }
 0x116   :  { %v209_v56 = vpop.permute.xlu0 %208 }
 0x117   :  { %v1725_v54 = vpop.eup %1724  ;;  %v211_v18 = vmul.f32 %v209_v56, %v2025_v53 }
 0x118   :  { %v201_v55 = vmul.f32 %v1725_v54, %v1948_v30  ;;  %v92_v31 = vpop.f32.mrf.mxu0  ;;  %v133_v34 = vpop.f32.mrf.mxu1 }
 0x119   :  { %v93_v51 = vadd.f32 %v92_v31, %v1920_v7  ;;  %v134_v52 = vadd.f32 %v133_v34, %v1922_v8 }
 0x11a   :  { %v212_v57 = vmul.f32 %v209_v56, %v201_v55 }
 0x11c   :  { %214 = vrot.lane.b32.xlu1 %v212_v57, %s1897_s0 }
 0x18e   :  { %v215_v59 = vpop.permute.xlu1 %214 }
 0x18f   :  { %1674 = vmatmul.msk.f32.vlgmr.msra.gmra.mxu2 %vm216_vm2, %v215_v59  ;;  %1675 = vmatmul.msk.f32.vlgmr.msra.gmra.mxu3 %vm216_vm2, %v215_v59 }
 0x190   :  { %355 = vmatpush.msra.mxu2 %v1957_v35  ;;  %375 = vmatpush.msra.mxu3 %v1959_v36 }
 0x192   :  { %356 = vmatpush.msra.mxu2 %v1961_v37  ;;  %376 = vmatpush.msra.mxu3 %v1965_v38 }
 0x194   :  { %357 = vmatpush.msra.mxu2 %v1967_v39  ;;  %377 = vmatpush.msra.mxu3 %v1969_v40 }
 0x196   :  { %358 = vmatpush.msra.mxu2 %v1975_v41  ;;  %378 = vmatpush.msra.mxu3 %v1977_v42 }
 0x198   :  { %359 = vmatpush.msra.mxu2 %v1983_v43  ;;  %379 = vmatpush.msra.mxu3 %v1985_v44 }
 0x19a   :  { %360 = vmatpush.msra.mxu2 %v1991_v45  ;;  %380 = vmatpush.msra.mxu3 %v1993_v46 }
 0x19c   :  { %361 = vmatpush.msra.mxu2 %v1999_v47  ;;  %381 = vmatpush.msra.mxu3 %v2001_v48 }
 0x19e   :  { %362 = vmatpush.msra.mxu2 %v2007_v49  ;;  %382 = vmatpush.msra.mxu3 %v2009_v50 }
 0x212   :  { %v236_v0 = vpop.f32.mrf.mxu2  ;;  %v256_v1 = vpop.f32.mrf.mxu3 }
 0x213   :  { %v237_v2 = vadd.f32 %v236_v0, %v1924_v10  ;;  %v257_v3 = vadd.f32 %v256_v1, %v1926_v11 }
 0x215   :  { %v259_v4 = vadd.f32 %v237_v2, %v90_v62  ;;  %v260_v5 = vadd.f32 %v257_v3, %v131_v63 }
 0x217   :  { %v261_v6 = vmul.f32 %v259_v4, %v1929_v15  ;;  %v262_v9 = vmul.f32 %v260_v5, %v1932_v17 }
 0x219   :  { %1726 = vtanh.f32 %v261_v6 }
 0x21a   :  { %1728 = vtanh.f32 %v262_v9 }
 0x21f   :  { %v1727_v12 = vpop.eup %1726 }
 0x220   :  { %v1729_v13 = vpop.eup %1728  ;;  %v265_v14 = vmul.f32 %v1727_v12, %v1929_v15 }
 0x221   :  { %v266_v16 = vmul.f32 %v1729_v13, %v1932_v17  ;;  %v28_v13 = vld [vmem:[#allocation2 + $0x30] sm:$0xff] }
 0x222   :  { %v267_v19 = vadd.f32 %v265_v14, %v1939_v22  ;;  %1660 = vmatmul.msk.f32.gmra.mxu0 %vm44_vm0, %v28_v13  ;;  %1668 = vmatmul.msk.f32.gmra.mxu1 %vm44_vm0, %v28_v13 }
 0x223   :  { %v268_v20 = vadd.f32 %v266_v16, %v1942_v24 }
 0x224   :  { %v269_v21 = vmul.f32 %v267_v19, %v211_v18 }
 0x225   :  { %v270_v23 = vmul.f32 %v268_v20, %v267_v19 }
 0x227   :  { %272 = vrot.lane.b32.xlu1 %v270_v23, %s1897_s0 }
 0x299   :  { %v273_v25 = vpop.permute.xlu1 %272 }
 0x29a   :  { %v275_v26 = vadd.f32 %v273_v25, %v269_v21 }
 0x29c   :  { %1730 = vtanh.f32 %v275_v26 }
 0x29f   :  { %v95_v16 = vpop.f32.mrf.mxu0  ;;  %v136_v18 = vpop.f32.mrf.mxu1 }
 0x2a0   :  { %v96_v19 = vadd.f32 %v95_v16, %v1920_v7 }
 0x2a2   :  { %v1731_v27 = vpop.eup %1730 }
 0x2a3   :  { %v277_v28 = vmul.f32 %v1731_v27, %v268_v20  ;;  %v137_v20 = vadd.f32 %v136_v18, %v1922_v8 }
 0x2a5   :  { %279 = vrot.lane.b32.xlu2 %v277_v28, %s1897_s0 }
 0x2ff   :  { %v280_v30 = vpop.permute.xlu2 %279 }
 0x300   :  { %1676 = vmatmul.msk.f32.vlgmr.msrb.gmra.mxu2 %vm216_vm2, %v280_v30  ;;  %1677 = vmatmul.msk.f32.vlgmr.msrb.gmra.mxu3 %vm216_vm2, %v280_v30 }
 0x301   :  { %419 = vmatpush.msrb.mxu2 %v1957_v35  ;;  %439 = vmatpush.msrb.mxu3 %v1959_v36 }
 0x303   :  { %420 = vmatpush.msrb.mxu2 %v1961_v37  ;;  %440 = vmatpush.msrb.mxu3 %v1965_v38 }
 0x305   :  { %421 = vmatpush.msrb.mxu2 %v1967_v39  ;;  %441 = vmatpush.msrb.mxu3 %v1969_v40 }
 0x307   :  { %422 = vmatpush.msrb.mxu2 %v1975_v41  ;;  %442 = vmatpush.msrb.mxu3 %v1977_v42 }
 0x309   :  { %423 = vmatpush.msrb.mxu2 %v1983_v43  ;;  %443 = vmatpush.msrb.mxu3 %v1985_v44 }
 0x30b   :  { %424 = vmatpush.msrb.mxu2 %v1991_v45  ;;  %444 = vmatpush.msrb.mxu3 %v1993_v46 }
 0x30d   :  { %425 = vmatpush.msrb.mxu2 %v1999_v47  ;;  %445 = vmatpush.msrb.mxu3 %v2001_v48 }
 0x30f   :  { %426 = vmatpush.msrb.mxu2 %v2007_v49  ;;  %446 = vmatpush.msrb.mxu3 %v2009_v50 }
 0x383   :  { %v300_v53 = vpop.f32.mrf.mxu2  ;;  %v320_v54 = vpop.f32.mrf.mxu3 }
 0x384   :  { %v301_v55 = vadd.f32 %v300_v53, %v1924_v10  ;;  %v321_v56 = vadd.f32 %v320_v54, %v1926_v11 }
 0x386   :  { %v323_v57 = vadd.f32 %v301_v55, %v93_v51  ;;  %v324_v58 = vadd.f32 %v321_v56, %v134_v52 }
 0x388   :  { %v325_v59 = vmul.f32 %v323_v57, %v1929_v15  ;;  %v326_v60 = vmul.f32 %v324_v58, %v1932_v17 }
 0x38a   :  { %1732 = vtanh.f32 %v325_v59 }
 0x38b   :  { %1734 = vtanh.f32 %v326_v60 }
 0x390   :  { %v1733_v61 = vpop.eup %1732 }
 0x391   :  { %v1735_v62 = vpop.eup %1734  ;;  %v329_v63 = vmul.f32 %v1733_v61, %v1929_v15  ;;  %v29_v61 = vld [vmem:[#allocation2 + $0x40] sm:$0xff] }
 0x392   :  { %v330_v0 = vmul.f32 %v1735_v62, %v1932_v17  ;;  %1661 = vmatmul.msk.f32.gmra.mxu0 %vm44_vm0, %v29_v61  ;;  %1669 = vmatmul.msk.f32.gmra.mxu1 %vm44_vm0, %v29_v61 }
 0x393   :  { %v331_v1 = vadd.f32 %v329_v63, %v1939_v22 }
 0x394   :  { %v332_v2 = vadd.f32 %v330_v0, %v1942_v24 }
 0x395   :  { %v333_v4 = vmul.f32 %v331_v1, %v275_v26 }
 0x396   :  { %v334_v3 = vmul.f32 %v332_v2, %v331_v1 }
 0x398   :  { %336 = vrot.lane.b32.xlu2 %v334_v3, %s1897_s0  ;;  %v31_v3 = vld [vmem:[#allocation2 + $0x60] sm:$0xff] }
 0x3f2   :  { %v337_v5 = vpop.permute.xlu2 %336 }
 0x3f3   :  { %v339_v6 = vadd.f32 %v337_v5, %v333_v4  ;;  %v32_v4 = vld [vmem:[#allocation2 + $0x70] sm:$0xff] }
 0x3f5   :  { %1736 = vtanh.f32 %v339_v6 }
 0x3fb   :  { %v1737_v9 = vpop.eup %1736 }
 0x3fc   :  { %v341_v12 = vmul.f32 %v1737_v9, %v332_v2  ;;  %v30_v2 = vld [vmem:[#allocation2 + $0x50] sm:$0xff] }
 0x3fd   :  { %1662 = vmatmul.msk.f32.gmra.mxu0 %vm44_vm0, %v30_v2  ;;  %1670 = vmatmul.msk.f32.gmra.mxu1 %vm44_vm0, %v30_v2 }
 0x3fe   :  { %343 = vrot.lane.b32.xlu0 %v341_v12, %s1897_s0 }
 0x405   :  { %1663 = vmatmul.msk.f32.gmra.mxu0 %vm44_vm0, %v31_v3  ;;  %1671 = vmatmul.msk.f32.gmra.mxu1 %vm44_vm0, %v31_v3 }
 0x40d   :  { %1664 = vmatmul.msk.f32.gmra.mxu0 %vm44_vm0, %v32_v4  ;;  %1672 = vmatmul.msk.f32.gmra.mxu1 %vm44_vm0, %v32_v4 }
 0x470   :  { %v344_v14 = vpop.permute.xlu0 %343 }
 0x471   :  { %1678 = vmatmul.msk.f32.vlgmr.msra.gmra.mxu2 %vm216_vm2, %v344_v14  ;;  %1679 = vmatmul.msk.f32.vlgmr.msra.gmra.mxu3 %vm216_vm2, %v344_v14 }
 0x472   :  { %547 = vmatpush.msra.mxu2 %v1957_v35  ;;  %567 = vmatpush.msra.mxu3 %v1959_v36 }
 0x474   :  { %548 = vmatpush.msra.mxu2 %v1961_v37  ;;  %568 = vmatpush.msra.mxu3 %v1965_v38 }
 0x476   :  { %549 = vmatpush.msra.mxu2 %v1967_v39  ;;  %569 = vmatpush.msra.mxu3 %v1969_v40 }
 0x478   :  { %550 = vmatpush.msra.mxu2 %v1975_v41  ;;  %570 = vmatpush.msra.mxu3 %v1977_v42 }
 0x47a   :  { %551 = vmatpush.msra.mxu2 %v1983_v43  ;;  %571 = vmatpush.msra.mxu3 %v1985_v44 }
 0x47c   :  { %552 = vmatpush.msra.mxu2 %v1991_v45  ;;  %572 = vmatpush.msra.mxu3 %v1993_v46 }
 0x47e   :  { %553 = vmatpush.msra.mxu2 %v1999_v47  ;;  %573 = vmatpush.msra.mxu3 %v2001_v48 }
 0x480   :  { %554 = vmatpush.msra.mxu2 %v2007_v49  ;;  %574 = vmatpush.msra.mxu3 %v2009_v50 }
 0x4f4   :  { %v364_v21 = vpop.f32.mrf.mxu2  ;;  %v384_v23 = vpop.f32.mrf.mxu3 }
 0x4f5   :  { %v365_v25 = vadd.f32 %v364_v21, %v1924_v10  ;;  %v385_v26 = vadd.f32 %v384_v23, %v1926_v11 }
 0x4f7   :  { %v387_v27 = vadd.f32 %v365_v25, %v96_v19  ;;  %v388_v28 = vadd.f32 %v385_v26, %v137_v20 }
 0x4f9   :  { %v389_v29 = vmul.f32 %v387_v27, %v1929_v15  ;;  %v390_v30 = vmul.f32 %v388_v28, %v1932_v17 }
 0x4fb   :  { %1738 = vtanh.f32 %v389_v29 }
 0x4fc   :  { %1740 = vtanh.f32 %v390_v30 }
 0x501   :  { %v1739_v31 = vpop.eup %1738 }
 0x502   :  { %v1741_v34 = vpop.eup %1740  ;;  %v393_v51 = vmul.f32 %v1739_v31, %v1929_v15 }
 0x503   :  { %v394_v52 = vmul.f32 %v1741_v34, %v1932_v17 }
 0x504   :  { %v395_v53 = vadd.f32 %v393_v51, %v1939_v22 }
 0x505   :  { %v396_v54 = vadd.f32 %v394_v52, %v1942_v24 }
 0x506   :  { %v397_v56 = vmul.f32 %v395_v53, %v339_v6 }
 0x507   :  { %v398_v55 = vmul.f32 %v396_v54, %v395_v53 }
 0x509   :  { %400 = vrot.lane.b32.xlu1 %v398_v55, %s1897_s0 }
 0x57b   :  { %v401_v57 = vpop.permute.xlu1 %400 }
 0x57c   :  { %v403_v58 = vadd.f32 %v401_v57, %v397_v56 }
 0x57e   :  { %1742 = vtanh.f32 %v403_v58 }
 0x584   :  { %v1743_v59 = vpop.eup %1742 }
 0x585   :  { %v405_v60 = vmul.f32 %v1743_v59, %v396_v54 }
 0x587   :  { %407 = vrot.lane.b32.xlu2 %v405_v60, %s1897_s0 }
 0x5e1   :  { %v408_v62 = vpop.permute.xlu2 %407 }
 0x5e2   :  { %1680 = vmatmul.msk.f32.vlgmr.msrb.gmra.mxu2 %vm216_vm2, %v408_v62  ;;  %1681 = vmatmul.msk.f32.vlgmr.msrb.gmra.mxu3 %vm216_vm2, %v408_v62 }
 0x5e3   :  { %675 = vmatpush.msrb.mxu2 %v1957_v35  ;;  %695 = vmatpush.msrb.mxu3 %v1959_v36  ;;  %v98_v35 = vpop.f32.mrf.mxu0  ;;  %v139_v36 = vpop.f32.mrf.mxu1 }
 0x5e5   :  { %676 = vmatpush.msrb.mxu2 %v1961_v37  ;;  %696 = vmatpush.msrb.mxu3 %v1965_v38  ;;  %v99_v37 = vadd.f32 %v98_v35, %v1920_v7  ;;  %v140_v38 = vadd.f32 %v139_v36, %v1922_v8 }
 0x5e7   :  { %677 = vmatpush.msrb.mxu2 %v1967_v39  ;;  %697 = vmatpush.msrb.mxu3 %v1969_v40 }
 0x5e9   :  { %678 = vmatpush.msrb.mxu2 %v1975_v41  ;;  %698 = vmatpush.msrb.mxu3 %v1977_v42 }
 0x5eb   :  { %679 = vmatpush.msrb.mxu2 %v1983_v43  ;;  %699 = vmatpush.msrb.mxu3 %v1985_v44  ;;  %v101_v16 = vpop.f32.mrf.mxu0  ;;  %v142_v18 = vpop.f32.mrf.mxu1 }
 0x5ec   :  { %v102_v27 = vadd.f32 %v101_v16, %v1920_v7  ;;  %v143_v28 = vadd.f32 %v142_v18, %v1922_v8 }
 0x5ed   :  { %680 = vmatpush.msrb.mxu2 %v1991_v45  ;;  %700 = vmatpush.msrb.mxu3 %v1993_v46 }
 0x5ef   :  { %681 = vmatpush.msrb.mxu2 %v1999_v47  ;;  %701 = vmatpush.msrb.mxu3 %v2001_v48 }
 0x5f1   :  { %682 = vmatpush.msrb.mxu2 %v2007_v49  ;;  %702 = vmatpush.msrb.mxu3 %v2009_v50 }
 0x5f3   :  { %v104_v19 = vpop.f32.mrf.mxu0  ;;  %v145_v20 = vpop.f32.mrf.mxu1 }
 0x5fb   :  { %v2195_v21 = vpop.f32.mrf.mxu0  ;;  %v2197_v23 = vpop.f32.mrf.mxu1 }
 0x5fc   :  { %v108_v16 = vadd.f32 %v2195_v21, %v1920_v7  ;;  %v149_v18 = vadd.f32 %v2197_v23, %v1922_v8 }
 0x665   :  { %v428_v39 = vpop.f32.mrf.mxu2  ;;  %v448_v40 = vpop.f32.mrf.mxu3 }
 0x666   :  { %v429_v41 = vadd.f32 %v428_v39, %v1924_v10  ;;  %v449_v42 = vadd.f32 %v448_v40, %v1926_v11  ;;  %v105_v40 = vadd.f32 %v104_v19, %v1920_v7 }
 0x668   :  { %v451_v43 = vadd.f32 %v429_v41, %v99_v37  ;;  %v452_v44 = vadd.f32 %v449_v42, %v140_v38  ;;  %v146_v41 = vadd.f32 %v145_v20, %v1922_v8 }
 0x66a   :  { %v453_v45 = vmul.f32 %v451_v43, %v1929_v15  ;;  %v454_v46 = vmul.f32 %v452_v44, %v1932_v17 }
 0x66c   :  { %1744 = vtanh.f32 %v453_v45 }
 0x66d   :  { %1746 = vtanh.f32 %v454_v46 }
 0x672   :  { %v1745_v47 = vpop.eup %1744 }
 0x673   :  { %v1747_v48 = vpop.eup %1746  ;;  %v457_v49 = vmul.f32 %v1745_v47, %v1929_v15 }
 0x674   :  { %v458_v50 = vmul.f32 %v1747_v48, %v1932_v17 }
 0x675   :  { %v459_v63 = vadd.f32 %v457_v49, %v1939_v22 }
 0x676   :  { %v460_v0 = vadd.f32 %v458_v50, %v1942_v24 }
 0x677   :  { %v461_v5 = vmul.f32 %v459_v63, %v403_v58 }
 0x678   :  { %v462_v1 = vmul.f32 %v460_v0, %v459_v63 }
 0x67a   :  { %464 = vrot.lane.b32.xlu0 %v462_v1, %s1897_s0 }
 0x6ec   :  { %v465_v6 = vpop.permute.xlu0 %464 }
 0x6ed   :  { %v467_v9 = vadd.f32 %v465_v6, %v461_v5 }
 0x6ef   :  { %1748 = vtanh.f32 %v467_v9 }
 0x6f5   :  { %v1749_v12 = vpop.eup %1748 }
 0x6f6   :  { %v469_v13 = vmul.f32 %v1749_v12, %v460_v0 }
 0x6f8   :  { %471 = vrot.lane.b32.xlu1 %v469_v13, %s1897_s0 }
 0x76a   :  { %v472_v14 = vpop.permute.xlu1 %471 }
 0x76b   :  { %1682 = vmatmul.msk.f32.vlgmr.msrb.gmra.mxu0 %vm216_vm2, %v472_v14  ;;  %1683 = vmatmul.msk.f32.vlgmr.msrb.gmra.mxu1 %vm216_vm2, %v472_v14 }
 0x76c   :  { %813 = vmatpush.msrb.mxu1 %v2277_v32 }
 0x7e8   :  { %v492_v25 = vpop.f32.mrf.mxu0  ;;  %v512_v26 = vpop.f32.mrf.mxu1 }
 0x7e9   :  { %v493_v29 = vadd.f32 %v492_v25, %v1924_v10  ;;  %v513_v30 = vadd.f32 %v512_v26, %v1926_v11 }
 0x7eb   :  { %v515_v31 = vadd.f32 %v493_v29, %v102_v27  ;;  %v516_v34 = vadd.f32 %v513_v30, %v143_v28 }
 0x7ed   :  { %v517_v51 = vmul.f32 %v515_v31, %v1929_v15  ;;  %v518_v52 = vmul.f32 %v516_v34, %v1932_v17 }
 0x7ef   :  { %1750 = vtanh.f32 %v517_v51 }
 0x7f0   :  { %1752 = vtanh.f32 %v518_v52 }
 0x7f5   :  { %v1751_v53 = vpop.eup %1750 }
 0x7f6   :  { %v1753_v54 = vpop.eup %1752  ;;  %v521_v55 = vmul.f32 %v1751_v53, %v1929_v15 }
 0x7f7   :  { %v522_v56 = vmul.f32 %v1753_v54, %v1932_v17 }
 0x7f8   :  { %v523_v57 = vadd.f32 %v521_v55, %v1939_v22 }
 0x7f9   :  { %v524_v58 = vadd.f32 %v522_v56, %v1942_v24 }
 0x7fa   :  { %v525_v60 = vmul.f32 %v523_v57, %v467_v9 }
 0x7fb   :  { %v526_v59 = vmul.f32 %v524_v58, %v523_v57 }
 0x7fd   :  { %528 = vrot.lane.b32.xlu2 %v526_v59, %s1897_s0 }
 0x857   :  { %v529_v61 = vpop.permute.xlu2 %528 }
 0x858   :  { %v531_v62 = vadd.f32 %v529_v61, %v525_v60 }
 0x85a   :  { %1754 = vtanh.f32 %v531_v62 }
 0x860   :  { %v1755_v35 = vpop.eup %1754 }
 0x861   :  { %v533_v36 = vmul.f32 %v1755_v35, %v524_v58 }
 0x863   :  { %535 = vrot.lane.b32.xlu0 %v533_v36, %s1897_s0 }
 0x8d5   :  { %v536_v37 = vpop.permute.xlu0 %535 }
 0x8d6   :  { %1684 = vmatmul.msk.f32.vlgmr.msra.gmra.mxu2 %vm216_vm2, %v536_v37  ;;  %1685 = vmatmul.msk.f32.vlgmr.msra.gmra.mxu3 %vm216_vm2, %v536_v37 }
 0x8d7   :  { %957 = vmatpush.msra.mxu2 %v2277_v32  ;;  %1192 = vmatpush.msra.mxu3 %v2277_v32 }
 0x959   :  { %v556_v38 = vpop.f32.mrf.mxu2  ;;  %v576_v39 = vpop.f32.mrf.mxu3 }
 0x95a   :  { %v557_v42 = vadd.f32 %v556_v38, %v1924_v10  ;;  %v577_v43 = vadd.f32 %v576_v39, %v1926_v11 }
 0x95c   :  { %v579_v44 = vadd.f32 %v557_v42, %v105_v40  ;;  %v580_v45 = vadd.f32 %v577_v43, %v146_v41  ;;  %v725_v41 = vld [vmem:[#allocation2 + $0x130] sm:$0xff]  ;;  %v724_v42 = vld [vmem:[#allocation2 + $0x120] sm:$0xff] }
 0x95e   :  { %v581_v46 = vmul.f32 %v579_v44, %v1929_v15  ;;  %v582_v47 = vmul.f32 %v580_v45, %v1932_v17 }
 0x960   :  { %1756 = vtanh.f32 %v581_v46 }
 0x961   :  { %1758 = vtanh.f32 %v582_v47  ;;  %v2254_v47 = vld [vmem:[#allocation2 + $0x1c4] ss:$0 sm:$0xff] }
 0x966   :  { %v1757_v48 = vpop.eup %1756 }
 0x967   :  { %v1759_v49 = vpop.eup %1758  ;;  %v585_v50 = vmul.f32 %v1757_v48, %v1929_v15 }
 0x968   :  { %v586_v63 = vmul.f32 %v1759_v49, %v1932_v17  ;;  %v2258_v49 = vld [vmem:[#allocation2 + $0x1c5] ss:$0 sm:$0xff] }
 0x969   :  { %v587_v0 = vadd.f32 %v585_v50, %v1939_v22 }
 0x96a   :  { %v588_v1 = vadd.f32 %v586_v63, %v1942_v24 }
 0x96b   :  { %v589_v3 = vmul.f32 %v587_v0, %v531_v62 }
 0x96c   :  { %v590_v2 = vmul.f32 %v588_v1, %v587_v0  ;;  %v2264_v0 = vsub.f32 1.0, %v2258_v49 }
 0x96e   :  { %592 = vrot.lane.b32.xlu1 %v590_v2, %s1897_s0 }
 0x9e0   :  { %v593_v4 = vpop.permute.xlu1 %592 }
 0x9e1   :  { %v595_v5 = vadd.f32 %v593_v4, %v589_v3  ;;  %v1691_v4 = vsel %vm784_vm4, 1.0, %v1898_v33  ;;  %v2279_v33 = vld [vmem:[#allocation2 + $0x180] sm:$0xff] }
 0x9e2   :  { %814 = vmatpush.msrb.mxu1 %v2279_v33  ;;  %958 = vmatpush.msra.mxu2 %v2279_v33 }
 0x9e3   :  { %1760 = vtanh.f32 %v595_v5  ;;  %1193 = vmatpush.msra.mxu3 %v2279_v33 }
 0x9e9   :  { %v1761_v6 = vpop.eup %1760 }
 0x9ea   :  { %v597_v9 = vmul.f32 %v1761_v6, %v588_v1 }
 0x9ec   :  { %599 = vrot.lane.b32.xlu2 %v597_v9, %s1897_s0 }
 0xa46   :  { %v600_v12 = vpop.permute.xlu2 %599 }
 0xa47   :  { %1686 = vmatmul.msk.f32.vlgmr.msra.gmra.mxu0 %vm216_vm2, %v600_v12  ;;  %1687 = vmatmul.msk.f32.vlgmr.msra.gmra.mxu1 %vm216_vm2, %v600_v12 }
 0xac4   :  { %v620_v13 = vpop.f32.mrf.mxu0  ;;  %v640_v14 = vpop.f32.mrf.mxu1 }
 0xac5   :  { %v621_v19 = vadd.f32 %v620_v13, %v1924_v10  ;;  %v641_v20 = vadd.f32 %v640_v14, %v1926_v11 }
 0xac7   :  { %v643_v25 = vadd.f32 %v621_v19, %v108_v16  ;;  %v644_v26 = vadd.f32 %v641_v20, %v149_v18  ;;  %v2283_v16 = vld [vmem:[#allocation2 + $0x170] sm:$0xff]  ;;  %v2289_v18 = vld [vmem:[#allocation2 + $0x160] sm:$0xff] }
 0xac8   :  { %815 = vmatpush.msrb.mxu1 %v2283_v16  ;;  %959 = vmatpush.msra.mxu2 %v2283_v16 }
 0xac9   :  { %v645_v27 = vmul.f32 %v643_v25, %v1929_v15  ;;  %v646_v28 = vmul.f32 %v644_v26, %v1932_v17  ;;  %1194 = vmatpush.msra.mxu3 %v2283_v16 }
 0xaca   :  { %816 = vmatpush.msrb.mxu1 %v2289_v18  ;;  %960 = vmatpush.msra.mxu2 %v2289_v18 }
 0xacb   :  { %1762 = vtanh.f32 %v645_v27  ;;  %1195 = vmatpush.msra.mxu3 %v2289_v18 }
 0xacc   :  { %1764 = vtanh.f32 %v646_v28  ;;  %910 = vmatpush.msra.mxu1 %v2277_v32 }
 0xace   :  { %911 = vmatpush.msra.mxu1 %v2279_v33 }
 0xad0   :  { %912 = vmatpush.msra.mxu1 %v2283_v16 }
 0xad1   :  { %v1763_v29 = vpop.eup %1762 }
 0xad2   :  { %v1765_v30 = vpop.eup %1764  ;;  %v649_v31 = vmul.f32 %v1763_v29, %v1929_v15  ;;  %913 = vmatpush.msra.mxu1 %v2289_v18 }
 0xad3   :  { %v650_v7 = vmul.f32 %v1765_v30, %v1932_v17 }
 0xad4   :  { %v651_v8 = vadd.f32 %v649_v31, %v1939_v22 }
 0xad5   :  { %v652_v21 = vadd.f32 %v650_v7, %v1942_v24 }
 0xad6   :  { %v653_v34 = vmul.f32 %v651_v8, %v595_v5 }
 0xad7   :  { %v654_v23 = vmul.f32 %v652_v21, %v651_v8 }
 0xad9   :  { %656 = vrot.lane.b32.xlu0 %v654_v23, %s1897_s0 }
 0xb4b   :  { %v657_v51 = vpop.permute.xlu0 %656 }
 0xb4c   :  { %v659_v52 = vadd.f32 %v657_v51, %v653_v34 }
 0xb4e   :  { %1766 = vtanh.f32 %v659_v52 }
 0xb54   :  { %v1767_v53 = vpop.eup %1766 }
 0xb55   :  { %v661_v54 = vmul.f32 %v1767_v53, %v652_v21 }
 0xb57   :  { %663 = vrot.lane.b32.xlu1 %v661_v54, %s1897_s0 }
 0xbc9   :  { %v664_v55 = vpop.permute.xlu1 %663 }
 0xbca   :  { %1688 = vmatmul.msk.f32.vlgmr.msrb.gmra.mxu2 %vm216_vm2, %v664_v55  ;;  %1689 = vmatmul.msk.f32.vlgmr.msrb.gmra.mxu3 %vm216_vm2, %v664_v55 }
 0xbcb   :  { %1145 = vmatpush.msrb.mxu2 %v2277_v32  ;;  %1380 = vmatpush.msrb.mxu3 %v2277_v32 }
 0xbcd   :  { %1146 = vmatpush.msrb.mxu2 %v2279_v33  ;;  %1381 = vmatpush.msrb.mxu3 %v2279_v33 }
 0xbcf   :  { %1147 = vmatpush.msrb.mxu2 %v2283_v16  ;;  %1382 = vmatpush.msrb.mxu3 %v2283_v16 }
 0xbd1   :  { %1148 = vmatpush.msrb.mxu2 %v2289_v18  ;;  %1383 = vmatpush.msrb.mxu3 %v2289_v18 }
 0xc4d   :  { %v684_v56 = vpop.f32.mrf.mxu2  ;;  %v704_v57 = vpop.f32.mrf.mxu3 }
 0xc4e   :  { %v685_v58 = vadd.f32 %v684_v56, %v1924_v10  ;;  %v705_v59 = vadd.f32 %v704_v57, %v1926_v11  ;;  %v727_v10 = vld [vmem:[#allocation2 + $0x150] sm:$0xff]  ;;  %v726_v11 = vld [vmem:[#allocation2 + $0x140] sm:$0xff] }
 0xc4f   :  { %747 = vmatpush.msrb.mxu0 %v727_v10 }
 0xc50   :  { %v707_v60 = vmul.f32 %v685_v58, %v1929_v15  ;;  %v708_v61 = vmul.f32 %v705_v59, %v1932_v17 }
 0xc51   :  { %748 = vmatpush.msrb.mxu0 %v726_v11 }
 0xc52   :  { %1768 = vtanh.f32 %v707_v60 }
 0xc53   :  { %1770 = vtanh.f32 %v708_v61  ;;  %749 = vmatpush.msrb.mxu0 %v725_v41 }
 0xc55   :  { %750 = vmatpush.msrb.mxu0 %v724_v42 }
 0xc57   :  { %863 = vmatpush.msra.mxu0 %v2277_v32 }
 0xc58   :  { %v1769_v62 = vpop.eup %1768 }
 0xc59   :  { %v1771_v35 = vpop.eup %1770  ;;  %v711_v36 = vmul.f32 %v1769_v62, %v1929_v15  ;;  %864 = vmatpush.msra.mxu0 %v2279_v33 }
 0xc5a   :  { %v712_v37 = vmul.f32 %v1771_v35, %v1932_v17 }
 0xc5b   :  { %v713_v38 = vadd.f32 %v711_v36, %v1939_v22  ;;  %865 = vmatpush.msra.mxu0 %v2283_v16 }
 0xc5c   :  { %v714_v39 = vadd.f32 %v712_v37, %v1942_v24  ;;  %v728_v24 = vld [vmem:[#allocation2 + $0x1c3] ss:$0 sm:$0xff] }
 0xc5d   :  { %v715_v43 = vmul.f32 %v713_v38, %v659_v52  ;;  %866 = vmatpush.msra.mxu0 %v2289_v18 }
 0xc5e   :  { %v716_v40 = vmul.f32 %v714_v39, %v713_v38 }
 0xc60   :  { %718 = vrot.lane.b32.xlu2 %v716_v40, %s1897_s0 }
 0xcba   :  { %v719_v44 = vpop.permute.xlu2 %718 }
 0xcbb   :  { %v721_v15 = vadd.f32 %v719_v44, %v715_v43 }
 0xcbd   :  { %1772 = vtanh.f32 %v721_v15 }
 0xcc3   :  { %v1773_v17 = vpop.eup %1772 }
 0xcc4   :  { %v723_v45 = vmul.f32 %v1773_v17, %v714_v39 }
 0xcc6   :  { %730 = vrot.lane.b32.xlu0 %v723_v45, %s1899_s13 }
 0xd38   :  { %v731_v22 = vpop.permute.xlu0 %730 }
 0xd39   :  { %1690 = vmatmul.msk.f32.vlgmr.msrb.gmra.mxu0 %vm732_vm3, %v731_v22 }
 0xd3a   :  { %1004 = vmatpush.msrb.mxu0 %v2277_v32 }
 0xd3c   :  { %1005 = vmatpush.msrb.mxu0 %v2279_v33 }
 0xd3e   :  { %1006 = vmatpush.msrb.mxu0 %v2283_v16 }
 0xd40   :  { %1007 = vmatpush.msrb.mxu0 %v2289_v18 }
 0xdb6   :  { %v752_v46 = vpop.f32.mrf.mxu0 }
 0xdb7   :  { %v2256_v48 = vadd.f32 %v752_v46, %v728_v24 }
 0xdb9   :  { %v762_v50 = vadd.f32 %v2254_v47, %v2256_v48  ;;  %v2325_v30 = vrot.slane %v2256_v48, 1 }
 0xdbb   :  { %v763_v63 = vmul.f32 %v762_v50, %v2258_v49 }
 0xdbd   :  { %1774 = vtanh.f32 %v763_v63 }
 0xdc3   :  { %v1775_v1 = vpop.eup %1774 }
 0xdc4   :  { %v765_v2 = vmul.f32 %v1775_v1, %v2258_v49 }
 0xdc6   :  { %v766_v3 = vadd.f32 %v765_v2, %v2264_v0 }
 0xdc8   :  { %769 = vrot.lane.b32.xlu1 %v766_v3, %s1897_s0  ;;  %v767_v9 = vmul.f32 0.0, %v766_v3 }
 0xdd0   :  { %792 = vrot.lane.b32.xlu1 %v1691_v4, %s1900_s14 }
 0xdd8   :  { %788 = vrot.lane.b32.xlu1 %v1691_v4, %s1899_s13 }
 0xe3a   :  { %v770_v5 = vpop.permute.xlu1 %769 }
 0xe3b   :  { %v772_v6 = vmul.f32 %v770_v5, %v766_v3 }
 0xe3d   :  { %774 = vrot.lane.b32.xlu2 %v772_v6, %s1899_s13 }
 0xe42   :  { %v793_v25 = vpop.permute.xlu1 %792 }
 0xe4a   :  { %v789_v52 = vpop.permute.xlu1 %788 }
 0xe97   :  { %v775_v12 = vpop.permute.xlu2 %774 }
 0xe98   :  { %v2273_v13 = vadd.f32 %v775_v12, %v767_v9 }
 0xe9a   :  { %1776 = vtanh.f32 %v2273_v13  ;;  %v791_v53 = vmul.f32 %v789_v52, %v2273_v13 }
 0xea0   :  { %v1777_v14 = vpop.eup %1776 }
 0xea1   :  { %780 = vrot.lane.b32.xlu0 %v1777_v14, %s1897_s0 }
 0xf13   :  { %v781_v19 = vpop.permute.xlu0 %780 }
 0xf14   :  { %v783_v20 = vmul.f32 %v781_v19, %v766_v3 }
 0xf16   :  { %v795_v26 = vmul.f32 %v793_v25, %v783_v20 }
 0xf18   :  { %797 = vrot.lane.b32.xlu2 %v795_v26, %s1899_s13 }
 0xf72   :  { %v798_v27 = vpop.permute.xlu2 %797 }
 0xf73   :  { %1692 = vmatmul.msk.f32.vlgmr.msrb.gmra.mxu1 %vm732_vm3, %v798_v27 }
 0xf74   :  { %1098 = vmatpush.msrb.mxu1 %v2277_v32 }
 0xf76   :  { %1099 = vmatpush.msrb.mxu1 %v2279_v33 }
 0xf78   :  { %1100 = vmatpush.msrb.mxu1 %v2283_v16 }
 0xf7a   :  { %1101 = vmatpush.msrb.mxu1 %v2289_v18 }
 0xff0   :  { %v818_v28 = vpop.f32.mrf.mxu1 }
 0xff1   :  { %v819_v29 = vadd.f32 %v818_v28, %v2254_v47 }
 0xff3   :  { %v824_v31 = vadd.f32 %v2325_v30, %v819_v29 }
 0xff5   :  { %v825_v7 = vmul.f32 %v824_v31, %v2258_v49 }
 0xff7   :  { %1778 = vtanh.f32 %v825_v7 }
 0xffd   :  { %v1779_v8 = vpop.eup %1778 }
 0xffe   :  { %v827_v21 = vmul.f32 %v1779_v8, %v2258_v49 }
0x1000   :  { %v828_v23 = vadd.f32 %v827_v21, %v2264_v0 }
0x1002   :  { %831 = vrot.lane.b32.xlu0 %v828_v23, %s1897_s0  ;;  %v829_v54 = vmul.f32 %v828_v23, %v791_v53 }
0x1074   :  { %v832_v34 = vpop.permute.xlu0 %831 }
0x1075   :  { %v834_v51 = vmul.f32 %v832_v34, %v828_v23 }
0x1077   :  { %836 = vrot.lane.b32.xlu2 %v834_v51, %s1899_s13 }
0x10d1   :  { %v837_v55 = vpop.permute.xlu2 %836 }
0x10d2   :  { %v839_v56 = vadd.f32 %v837_v55, %v829_v54 }
0x10d4   :  { %1780 = vtanh.f32 %v839_v56 }
0x10da   :  { %v1781_v57 = vpop.eup %1780 }
0x10db   :  { %842 = vrot.lane.b32.xlu0 %v1781_v57, %s1897_s0 }
0x114d   :  { %v843_v58 = vpop.permute.xlu0 %842 }
0x114e   :  { %v845_v59 = vmul.f32 %v843_v58, %v828_v23 }
0x1150   :  { %847 = vrot.lane.b32.xlu1 %v845_v59, %s1899_s13 }
0x11c2   :  { %v848_v60 = vpop.permute.xlu1 %847 }
0x11c3   :  { %1693 = vmatmul.msk.f32.vlgmr.msra.gmra.mxu0 %vm732_vm3, %v848_v60 }
0x11c4   :  { %1051 = vmatpush.msra.mxu0 %v2277_v32 }
0x11c6   :  { %1052 = vmatpush.msra.mxu0 %v2279_v33 }
0x11c8   :  { %1053 = vmatpush.msra.mxu0 %v2283_v16 }
0x11ca   :  { %1054 = vmatpush.msra.mxu0 %v2289_v18 }
0x1240   :  { %v868_v61 = vpop.f32.mrf.mxu0 }
0x1241   :  { %v869_v62 = vadd.f32 %v868_v61, %v2254_v47 }
0x1243   :  { %v871_v35 = vadd.f32 %v869_v62, %v2256_v48 }
0x1245   :  { %v872_v36 = vmul.f32 %v871_v35, %v2258_v49 }
0x1247   :  { %1782 = vtanh.f32 %v872_v36 }
0x124d   :  { %v1783_v37 = vpop.eup %1782 }
0x124e   :  { %v874_v38 = vmul.f32 %v1783_v37, %v2258_v49 }
0x1250   :  { %v875_v39 = vadd.f32 %v874_v38, %v2264_v0 }
0x1252   :  { %878 = vrot.lane.b32.xlu2 %v875_v39, %s1897_s0  ;;  %v876_v11 = vmul.f32 %v875_v39, %v839_v56 }
0x12ac   :  { %v879_v40 = vpop.permute.xlu2 %878 }
0x12ad   :  { %v881_v10 = vmul.f32 %v879_v40, %v875_v39 }
0x12af   :  { %883 = vrot.lane.b32.xlu0 %v881_v10, %s1899_s13 }
0x1321   :  { %v884_v41 = vpop.permute.xlu0 %883 }
0x1322   :  { %v886_v42 = vadd.f32 %v884_v41, %v876_v11 }
0x1324   :  { %1784 = vtanh.f32 %v886_v42 }
0x132a   :  { %v1785_v43 = vpop.eup %1784 }
0x132b   :  { %889 = vrot.lane.b32.xlu1 %v1785_v43, %s1897_s0 }
0x139d   :  { %v890_v44 = vpop.permute.xlu1 %889 }
0x139e   :  { %v892_v15 = vmul.f32 %v890_v44, %v875_v39 }
0x13a0   :  { %894 = vrot.lane.b32.xlu2 %v892_v15, %s1899_s13  ;;  %v1550_v12 = vrot.slane %v892_v15, 7 }
0x13a2   :  { %v1580_v20 = vsel %vm1579_vm5, %v845_v59, %v1550_v12 }
0x13fa   :  { %v895_v17 = vpop.permute.xlu2 %894 }
0x13fb   :  { %1694 = vmatmul.msk.f32.vlgmr.msra.gmra.mxu1 %vm732_vm3, %v895_v17 }
0x13fc   :  { %1286 = vmatpush.msra.mxu1 %v2277_v32 }
0x13fe   :  { %1287 = vmatpush.msra.mxu1 %v2279_v33 }
0x1400   :  { %1288 = vmatpush.msra.mxu1 %v2283_v16 }
0x1402   :  { %1289 = vmatpush.msra.mxu1 %v2289_v18 }
0x1478   :  { %v915_v45 = vpop.f32.mrf.mxu1 }
0x1479   :  { %v916_v22 = vadd.f32 %v915_v45, %v2254_v47 }
0x147b   :  { %v918_v24 = vadd.f32 %v916_v22, %v2325_v30 }
0x147d   :  { %v919_v46 = vmul.f32 %v918_v24, %v2258_v49 }
0x147f   :  { %1786 = vtanh.f32 %v919_v46 }
0x1485   :  { %v1787_v50 = vpop.eup %1786 }
0x1486   :  { %v921_v63 = vmul.f32 %v1787_v50, %v2258_v49 }
0x1488   :  { %v922_v1 = vadd.f32 %v921_v63, %v2264_v0 }
0x148a   :  { %925 = vrot.lane.b32.xlu0 %v922_v1, %s1897_s0  ;;  %v923_v4 = vmul.f32 %v922_v1, %v886_v42 }
0x14fc   :  { %v926_v2 = vpop.permute.xlu0 %925 }
0x14fd   :  { %v928_v3 = vmul.f32 %v926_v2, %v922_v1 }
0x14ff   :  { %930 = vrot.lane.b32.xlu1 %v928_v3, %s1899_s13 }
0x1571   :  { %v931_v5 = vpop.permute.xlu1 %930 }
0x1572   :  { %v933_v6 = vadd.f32 %v931_v5, %v923_v4 }
0x1574   :  { %1788 = vtanh.f32 %v933_v6 }
0x157a   :  { %v1789_v9 = vpop.eup %1788 }
0x157b   :  { %936 = vrot.lane.b32.xlu2 %v1789_v9, %s1897_s0 }
0x15d5   :  { %v937_v13 = vpop.permute.xlu2 %936 }
0x15d6   :  { %v939_v14 = vmul.f32 %v937_v13, %v922_v1 }
0x15d8   :  { %v1552_v19 = vrot.slane %v939_v14, 6  ;;  %941 = vrot.lane.b32.xlu0 %v939_v14, %s1899_s13 }
0x15da   :  { %v1582_v25 = vsel %vm1581_vm6, %v1580_v20, %v1552_v19 }
0x164a   :  { %v942_v26 = vpop.permute.xlu0 %941 }
0x164b   :  { %1695 = vmatmul.msk.f32.vlgmr.msra.gmra.mxu2 %vm732_vm3, %v942_v26 }
0x164c   :  { %1333 = vmatpush.msra.mxu2 %v2277_v32 }
0x164e   :  { %1334 = vmatpush.msra.mxu2 %v2279_v33 }
0x1650   :  { %1335 = vmatpush.msra.mxu2 %v2283_v16 }
0x1652   :  { %1336 = vmatpush.msra.mxu2 %v2289_v18 }
0x16ce   :  { %v962_v27 = vpop.f32.mrf.mxu2 }
0x16cf   :  { %v963_v28 = vadd.f32 %v962_v27, %v2254_v47 }
0x16d1   :  { %v965_v29 = vadd.f32 %v963_v28, %v2256_v48 }
0x16d3   :  { %v966_v31 = vmul.f32 %v965_v29, %v2258_v49 }
0x16d5   :  { %1790 = vtanh.f32 %v966_v31 }
0x16db   :  { %v1791_v7 = vpop.eup %1790 }
0x16dc   :  { %v968_v8 = vmul.f32 %v1791_v7, %v2258_v49 }
0x16de   :  { %v969_v21 = vadd.f32 %v968_v8, %v2264_v0 }
0x16e0   :  { %972 = vrot.lane.b32.xlu1 %v969_v21, %s1897_s0  ;;  %v970_v51 = vmul.f32 %v969_v21, %v933_v6 }
0x1752   :  { %v973_v23 = vpop.permute.xlu1 %972 }
0x1753   :  { %v975_v34 = vmul.f32 %v973_v23, %v969_v21 }
0x1755   :  { %977 = vrot.lane.b32.xlu2 %v975_v34, %s1899_s13 }
0x17af   :  { %v978_v52 = vpop.permute.xlu2 %977 }
0x17b0   :  { %v980_v53 = vadd.f32 %v978_v52, %v970_v51 }
0x17b2   :  { %1792 = vtanh.f32 %v980_v53 }
0x17b8   :  { %v1793_v54 = vpop.eup %1792 }
0x17b9   :  { %983 = vrot.lane.b32.xlu0 %v1793_v54, %s1897_s0 }
0x182b   :  { %v984_v55 = vpop.permute.xlu0 %983 }
0x182c   :  { %v986_v56 = vmul.f32 %v984_v55, %v969_v21 }
0x182e   :  { %v1554_v57 = vrot.slane %v986_v56, 5  ;;  %988 = vrot.lane.b32.xlu1 %v986_v56, %s1899_s13 }
0x1830   :  { %v1584_v58 = vsel %vm1583_vm7, %v1582_v25, %v1554_v57 }
0x18a0   :  { %v989_v59 = vpop.permute.xlu1 %988 }
0x18a1   :  { %1696 = vmatmul.msk.f32.vlgmr.msrb.gmra.mxu0 %vm732_vm3, %v989_v59 }
0x18a2   :  { %1239 = vmatpush.msrb.mxu0 %v2277_v32 }
0x18a4   :  { %1240 = vmatpush.msrb.mxu0 %v2279_v33 }
0x18a6   :  { %1241 = vmatpush.msrb.mxu0 %v2283_v16 }
0x18a8   :  { %1242 = vmatpush.msrb.mxu0 %v2289_v18 }
0x191e   :  { %v1009_v60 = vpop.f32.mrf.mxu0 }
0x191f   :  { %v1010_v61 = vadd.f32 %v1009_v60, %v2254_v47 }
0x1921   :  { %v1012_v62 = vadd.f32 %v1010_v61, %v2325_v30 }
0x1923   :  { %v1013_v35 = vmul.f32 %v1012_v62, %v2258_v49 }
0x1925   :  { %1794 = vtanh.f32 %v1013_v35 }
0x192b   :  { %v1795_v36 = vpop.eup %1794 }
0x192c   :  { %v1015_v37 = vmul.f32 %v1795_v36, %v2258_v49 }
0x192e   :  { %v1016_v38 = vadd.f32 %v1015_v37, %v2264_v0 }
0x1930   :  { %1019 = vrot.lane.b32.xlu2 %v1016_v38, %s1897_s0  ;;  %v1017_v10 = vmul.f32 %v1016_v38, %v980_v53 }
0x198a   :  { %v1020_v39 = vpop.permute.xlu2 %1019 }
0x198b   :  { %v1022_v40 = vmul.f32 %v1020_v39, %v1016_v38 }
0x198d   :  { %1024 = vrot.lane.b32.xlu0 %v1022_v40, %s1899_s13 }
0x19ff   :  { %v1025_v11 = vpop.permute.xlu0 %1024 }
0x1a00   :  { %v1027_v41 = vadd.f32 %v1025_v11, %v1017_v10 }
0x1a02   :  { %1796 = vtanh.f32 %v1027_v41 }
0x1a08   :  { %v1797_v42 = vpop.eup %1796 }
0x1a09   :  { %1030 = vrot.lane.b32.xlu1 %v1797_v42, %s1897_s0 }
0x1a7b   :  { %v1031_v43 = vpop.permute.xlu1 %1030 }
0x1a7c   :  { %v1033_v44 = vmul.f32 %v1031_v43, %v1016_v38 }
0x1a7e   :  { %v1556_v15 = vrot.slane %v1033_v44, 4  ;;  %1035 = vrot.lane.b32.xlu2 %v1033_v44, %s1899_s13 }
0x1a80   :  { %v1586_v17 = vsel %vm1585_vm8, %v1584_v58, %v1556_v15 }
0x1ad8   :  { %v1036_v45 = vpop.permute.xlu2 %1035 }
0x1ad9   :  { %1697 = vmatmul.msk.f32.vlgmr.msra.gmra.mxu0 %vm732_vm3, %v1036_v45 }
0x1ada   :  { %1427 = vmatpush.msra.mxu0 %v2277_v32 }
0x1adc   :  { %1428 = vmatpush.msra.mxu0 %v2279_v33 }
0x1ade   :  { %1429 = vmatpush.msra.mxu0 %v2283_v16 }
0x1ae0   :  { %1430 = vmatpush.msra.mxu0 %v2289_v18 }
0x1b56   :  { %v1056_v22 = vpop.f32.mrf.mxu0 }
0x1b57   :  { %v1057_v24 = vadd.f32 %v1056_v22, %v2254_v47 }
0x1b59   :  { %v1059_v46 = vadd.f32 %v1057_v24, %v2256_v48 }
0x1b5b   :  { %v1060_v50 = vmul.f32 %v1059_v46, %v2258_v49 }
0x1b5d   :  { %1798 = vtanh.f32 %v1060_v50 }
0x1b63   :  { %v1799_v63 = vpop.eup %1798 }
0x1b64   :  { %v1062_v1 = vmul.f32 %v1799_v63, %v2258_v49 }
0x1b66   :  { %v1063_v2 = vadd.f32 %v1062_v1, %v2264_v0 }
0x1b68   :  { %1066 = vrot.lane.b32.xlu0 %v1063_v2, %s1897_s0  ;;  %v1064_v5 = vmul.f32 %v1063_v2, %v1027_v41 }
0x1bda   :  { %v1067_v3 = vpop.permute.xlu0 %1066 }
0x1bdb   :  { %v1069_v4 = vmul.f32 %v1067_v3, %v1063_v2 }
0x1bdd   :  { %1071 = vrot.lane.b32.xlu1 %v1069_v4, %s1899_s13 }
0x1c4f   :  { %v1072_v6 = vpop.permute.xlu1 %1071 }
0x1c50   :  { %v1074_v9 = vadd.f32 %v1072_v6, %v1064_v5 }
0x1c52   :  { %1800 = vtanh.f32 %v1074_v9 }
0x1c58   :  { %v1801_v12 = vpop.eup %1800 }
0x1c59   :  { %1077 = vrot.lane.b32.xlu2 %v1801_v12, %s1897_s0 }
0x1cb3   :  { %v1078_v13 = vpop.permute.xlu2 %1077 }
0x1cb4   :  { %v1080_v14 = vmul.f32 %v1078_v13, %v1063_v2 }
0x1cb6   :  { %v1558_v19 = vrot.slane %v1080_v14, 3  ;;  %1082 = vrot.lane.b32.xlu0 %v1080_v14, %s1899_s13 }
0x1cb8   :  { %v1588_v20 = vsel %vm1587_vm9, %v1586_v17, %v1558_v19 }
0x1d28   :  { %v1083_v25 = vpop.permute.xlu0 %1082 }
0x1d29   :  { %1698 = vmatmul.msk.f32.vlgmr.msrb.gmra.mxu1 %vm732_vm3, %v1083_v25 }
0x1d2a   :  { %1474 = vmatpush.msrb.mxu1 %v2277_v32 }
0x1d2c   :  { %1475 = vmatpush.msrb.mxu1 %v2279_v33 }
0x1d2e   :  { %1476 = vmatpush.msrb.mxu1 %v2283_v16 }
0x1d30   :  { %1477 = vmatpush.msrb.mxu1 %v2289_v18 }
0x1da6   :  { %v1103_v26 = vpop.f32.mrf.mxu1 }
0x1da7   :  { %v1104_v27 = vadd.f32 %v1103_v26, %v2254_v47 }
0x1da9   :  { %v1106_v28 = vadd.f32 %v1104_v27, %v2325_v30 }
0x1dab   :  { %v1107_v29 = vmul.f32 %v1106_v28, %v2258_v49 }
0x1dad   :  { %1802 = vtanh.f32 %v1107_v29 }
0x1db3   :  { %v1803_v31 = vpop.eup %1802 }
0x1db4   :  { %v1109_v7 = vmul.f32 %v1803_v31, %v2258_v49 }
0x1db6   :  { %v1110_v8 = vadd.f32 %v1109_v7, %v2264_v0 }
0x1db8   :  { %1113 = vrot.lane.b32.xlu1 %v1110_v8, %s1897_s0  ;;  %v1111_v34 = vmul.f32 %v1110_v8, %v1074_v9 }
0x1e2a   :  { %v1114_v21 = vpop.permute.xlu1 %1113 }
0x1e2b   :  { %v1116_v23 = vmul.f32 %v1114_v21, %v1110_v8 }
0x1e2d   :  { %1118 = vrot.lane.b32.xlu2 %v1116_v23, %s1899_s13 }
0x1e87   :  { %v1119_v51 = vpop.permute.xlu2 %1118 }
0x1e88   :  { %v1121_v52 = vadd.f32 %v1119_v51, %v1111_v34 }
0x1e8a   :  { %1804 = vtanh.f32 %v1121_v52 }
0x1e90   :  { %v1805_v53 = vpop.eup %1804 }
0x1e91   :  { %1124 = vrot.lane.b32.xlu0 %v1805_v53, %s1897_s0 }
0x1f03   :  { %v1125_v54 = vpop.permute.xlu0 %1124 }
0x1f04   :  { %v1127_v55 = vmul.f32 %v1125_v54, %v1110_v8 }
0x1f06   :  { %v1560_v56 = vrot.slane %v1127_v55, 2  ;;  %1129 = vrot.lane.b32.xlu1 %v1127_v55, %s1899_s13 }
0x1f08   :  { %v1590_v57 = vsel %vm1589_vm10, %v1588_v20, %v1560_v56 }
0x1f78   :  { %v1130_v58 = vpop.permute.xlu1 %1129 }
0x1f79   :  { %1699 = vmatmul.msk.f32.vlgmr.msrb.gmra.mxu2 %vm732_vm3, %v1130_v58 }
0x1f7a   :  { %1521 = vmatpush.msrb.mxu2 %v2277_v32 }
0x1f7c   :  { %1522 = vmatpush.msrb.mxu2 %v2279_v33 }
0x1f7e   :  { %1523 = vmatpush.msrb.mxu2 %v2283_v16 }
0x1f80   :  { %1524 = vmatpush.msrb.mxu2 %v2289_v18 }
0x1ffc   :  { %v1150_v59 = vpop.f32.mrf.mxu2 }
0x1ffd   :  { %v1151_v60 = vadd.f32 %v1150_v59, %v2254_v47 }
0x1fff   :  { %v1153_v61 = vadd.f32 %v1151_v60, %v2256_v48 }
0x2001   :  { %v1154_v62 = vmul.f32 %v1153_v61, %v2258_v49 }
0x2003   :  { %1806 = vtanh.f32 %v1154_v62 }
0x2009   :  { %v1807_v35 = vpop.eup %1806 }
0x200a   :  { %v1156_v36 = vmul.f32 %v1807_v35, %v2258_v49 }
0x200c   :  { %v1157_v37 = vadd.f32 %v1156_v36, %v2264_v0 }
0x200e   :  { %1160 = vrot.lane.b32.xlu2 %v1157_v37, %s1897_s0  ;;  %v1158_v16 = vmul.f32 %v1157_v37, %v1121_v52 }
0x2068   :  { %v1161_v32 = vpop.permute.xlu2 %1160 }
0x2069   :  { %v1163_v33 = vmul.f32 %v1161_v32, %v1157_v37 }
0x206b   :  { %1165 = vrot.lane.b32.xlu0 %v1163_v33, %s1899_s13 }
0x20dd   :  { %v1166_v18 = vpop.permute.xlu0 %1165 }
0x20de   :  { %v1168_v38 = vadd.f32 %v1166_v18, %v1158_v16 }
0x20e0   :  { %1808 = vtanh.f32 %v1168_v38 }
0x20e6   :  { %v1809_v39 = vpop.eup %1808 }
0x20e7   :  { %1171 = vrot.lane.b32.xlu1 %v1809_v39, %s1897_s0 }
0x2159   :  { %v1172_v40 = vpop.permute.xlu1 %1171 }
0x215a   :  { %v1174_v10 = vmul.f32 %v1172_v40, %v1157_v37 }
0x215c   :  { %v1562_v11 = vrot.slane %v1174_v10, 1  ;;  %1176 = vrot.lane.b32.xlu2 %v1174_v10, %s1899_s13 }
0x215e   :  { %v2441_v41 = vsel %vm1591_vm11, %v1590_v57, %v1562_v11 }
0x21b6   :  { %v1177_v42 = vpop.permute.xlu2 %1176 }
0x21b7   :  { %1700 = vmatmul.msk.f32.vlgmr.msra.gmra.mxu3 %vm732_vm3, %v1177_v42 }
0x223a   :  { %v1197_v43 = vpop.f32.mrf.mxu3 }
0x223b   :  { %v1198_v44 = vadd.f32 %v1197_v43, %v2254_v47 }
0x223d   :  { %v1200_v15 = vadd.f32 %v1198_v44, %v2325_v30 }
0x223f   :  { %v1201_v17 = vmul.f32 %v1200_v15, %v2258_v49 }
0x2241   :  { %1810 = vtanh.f32 %v1201_v17 }
0x2247   :  { %v1811_v45 = vpop.eup %1810 }
0x2248   :  { %v1203_v22 = vmul.f32 %v1811_v45, %v2258_v49 }
0x224a   :  { %v1204_v24 = vadd.f32 %v1203_v22, %v2264_v0 }
0x224c   :  { %1207 = vrot.lane.b32.xlu0 %v1204_v24, %s1897_s0  ;;  %v1205_v63 = vmul.f32 %v1204_v24, %v1168_v38 }
0x22be   :  { %v1208_v46 = vpop.permute.xlu0 %1207 }
0x22bf   :  { %v1210_v50 = vmul.f32 %v1208_v46, %v1204_v24 }
0x22c1   :  { %1212 = vrot.lane.b32.xlu1 %v1210_v50, %s1899_s13 }
0x2333   :  { %v1213_v1 = vpop.permute.xlu1 %1212 }
0x2334   :  { %v1215_v2 = vadd.f32 %v1213_v1, %v1205_v63 }
0x2336   :  { %1812 = vtanh.f32 %v1215_v2 }
0x233c   :  { %v1813_v3 = vpop.eup %1812 }
0x233d   :  { %1218 = vrot.lane.b32.xlu2 %v1813_v3, %s1897_s0 }
0x2397   :  { %v1219_v4 = vpop.permute.xlu2 %1218 }
0x2398   :  { %v1221_v5 = vmul.f32 %v1219_v4, %v1204_v24 }
0x239a   :  { %1223 = vrot.lane.b32.xlu0 %v1221_v5, %s1899_s13 }
0x240c   :  { %v1224_v6 = vpop.permute.xlu0 %1223 }
0x240d   :  { %1701 = vmatmul.msk.f32.vlgmr.msrb.gmra.mxu0 %vm732_vm3, %v1224_v6 }
0x248a   :  { %v1244_v9 = vpop.f32.mrf.mxu0 }
0x248b   :  { %v1245_v12 = vadd.f32 %v1244_v9, %v2254_v47 }
0x248d   :  { %v1247_v13 = vadd.f32 %v1245_v12, %v2256_v48 }
0x248f   :  { %v1248_v14 = vmul.f32 %v1247_v13, %v2258_v49 }
0x2491   :  { %1814 = vtanh.f32 %v1248_v14 }
0x2497   :  { %v1815_v19 = vpop.eup %1814 }
0x2498   :  { %v1250_v20 = vmul.f32 %v1815_v19, %v2258_v49 }
0x249a   :  { %v1251_v25 = vadd.f32 %v1250_v20, %v2264_v0 }
0x249c   :  { %1254 = vrot.lane.b32.xlu1 %v1251_v25, %s1897_s0  ;;  %v1252_v28 = vmul.f32 %v1251_v25, %v1215_v2 }
0x250e   :  { %v1255_v26 = vpop.permute.xlu1 %1254 }
0x250f   :  { %v1257_v27 = vmul.f32 %v1255_v26, %v1251_v25 }
0x2511   :  { %1259 = vrot.lane.b32.xlu2 %v1257_v27, %s1899_s13 }
0x256b   :  { %v1260_v29 = vpop.permute.xlu2 %1259 }
0x256c   :  { %v1262_v31 = vadd.f32 %v1260_v29, %v1252_v28 }
0x256e   :  { %1816 = vtanh.f32 %v1262_v31 }
0x2574   :  { %v1817_v7 = vpop.eup %1816 }
0x2575   :  { %1265 = vrot.lane.b32.xlu0 %v1817_v7, %s1897_s0 }
0x25e7   :  { %v1266_v8 = vpop.permute.xlu0 %1265 }
0x25e8   :  { %v1268_v21 = vmul.f32 %v1266_v8, %v1251_v25 }
0x25ea   :  { %1270 = vrot.lane.b32.xlu1 %v1268_v21, %s1899_s13  ;;  %v1564_v35 = vrot.slane %v1268_v21, 7 }
0x25ec   :  { %v1593_v33 = vsel %vm1579_vm5, %v1221_v5, %v1564_v35 }
0x265c   :  { %v1271_v23 = vpop.permute.xlu1 %1270 }
0x265d   :  { %1702 = vmatmul.msk.f32.vlgmr.msra.gmra.mxu1 %vm732_vm3, %v1271_v23 }
0x26da   :  { %v1291_v34 = vpop.f32.mrf.mxu1 }
0x26db   :  { %v1292_v51 = vadd.f32 %v1291_v34, %v2254_v47 }
0x26dd   :  { %v1294_v52 = vadd.f32 %v1292_v51, %v2325_v30 }
0x26df   :  { %v1295_v53 = vmul.f32 %v1294_v52, %v2258_v49 }
0x26e1   :  { %1818 = vtanh.f32 %v1295_v53 }
0x26e7   :  { %v1819_v54 = vpop.eup %1818 }
0x26e8   :  { %v1297_v55 = vmul.f32 %v1819_v54, %v2258_v49 }
0x26ea   :  { %v1298_v56 = vadd.f32 %v1297_v55, %v2264_v0 }
0x26ec   :  { %1301 = vrot.lane.b32.xlu2 %v1298_v56, %s1897_s0  ;;  %v1299_v59 = vmul.f32 %v1298_v56, %v1262_v31 }
0x2746   :  { %v1302_v57 = vpop.permute.xlu2 %1301 }
0x2747   :  { %v1304_v58 = vmul.f32 %v1302_v57, %v1298_v56 }
0x2749   :  { %1306 = vrot.lane.b32.xlu0 %v1304_v58, %s1899_s13 }
0x27bb   :  { %v1307_v60 = vpop.permute.xlu0 %1306 }
0x27bc   :  { %v1309_v61 = vadd.f32 %v1307_v60, %v1299_v59 }
0x27be   :  { %1820 = vtanh.f32 %v1309_v61 }
0x27c4   :  { %v1821_v62 = vpop.eup %1820 }
0x27c5   :  { %1312 = vrot.lane.b32.xlu1 %v1821_v62, %s1897_s0 }
0x2837   :  { %v1313_v36 = vpop.permute.xlu1 %1312 }
0x2838   :  { %v1315_v37 = vmul.f32 %v1313_v36, %v1298_v56 }
0x283a   :  { %v1566_v32 = vrot.slane %v1315_v37, 6  ;;  %1317 = vrot.lane.b32.xlu2 %v1315_v37, %s1899_s13 }
0x283c   :  { %v1594_v16 = vsel %vm1581_vm6, %v1593_v33, %v1566_v32 }
0x2894   :  { %v1318_v18 = vpop.permute.xlu2 %1317 }
0x2895   :  { %1703 = vmatmul.msk.f32.vlgmr.msra.gmra.mxu2 %vm732_vm3, %v1318_v18 }
0x2918   :  { %v1338_v38 = vpop.f32.mrf.mxu2 }
0x2919   :  { %v1339_v39 = vadd.f32 %v1338_v38, %v2254_v47 }
0x291b   :  { %v1341_v40 = vadd.f32 %v1339_v39, %v2256_v48 }
0x291d   :  { %v1342_v10 = vmul.f32 %v1341_v40, %v2258_v49 }
0x291f   :  { %1822 = vtanh.f32 %v1342_v10 }
0x2925   :  { %v1823_v11 = vpop.eup %1822 }
0x2926   :  { %v1344_v42 = vmul.f32 %v1823_v11, %v2258_v49 }
0x2928   :  { %v1345_v43 = vadd.f32 %v1344_v42, %v2264_v0 }
0x292a   :  { %1348 = vrot.lane.b32.xlu0 %v1345_v43, %s1897_s0  ;;  %v1346_v17 = vmul.f32 %v1345_v43, %v1309_v61 }
0x299c   :  { %v1349_v44 = vpop.permute.xlu0 %1348 }
0x299d   :  { %v1351_v15 = vmul.f32 %v1349_v44, %v1345_v43 }
0x299f   :  { %1353 = vrot.lane.b32.xlu1 %v1351_v15, %s1899_s13 }
0x2a11   :  { %v1354_v45 = vpop.permute.xlu1 %1353 }
0x2a12   :  { %v1356_v22 = vadd.f32 %v1354_v45, %v1346_v17 }
0x2a14   :  { %1824 = vtanh.f32 %v1356_v22 }
0x2a1a   :  { %v1825_v24 = vpop.eup %1824 }
0x2a1b   :  { %1359 = vrot.lane.b32.xlu2 %v1825_v24, %s1897_s0 }
0x2a75   :  { %v1360_v46 = vpop.permute.xlu2 %1359 }
0x2a76   :  { %v1362_v50 = vmul.f32 %v1360_v46, %v1345_v43 }
0x2a78   :  { %v1568_v63 = vrot.slane %v1362_v50, 5  ;;  %1364 = vrot.lane.b32.xlu0 %v1362_v50, %s1899_s13 }
0x2a7a   :  { %v1595_v1 = vsel %vm1583_vm7, %v1594_v16, %v1568_v63 }
0x2aea   :  { %v1365_v2 = vpop.permute.xlu0 %1364 }
0x2aeb   :  { %1704 = vmatmul.msk.f32.vlgmr.msrb.gmra.mxu3 %vm732_vm3, %v1365_v2 }
0x2b6e   :  { %v1385_v3 = vpop.f32.mrf.mxu3 }
0x2b6f   :  { %v1386_v4 = vadd.f32 %v1385_v3, %v2254_v47  ;;  %v1601_v3 = vld [vmem:[#allocation2 + $0x1b0] sm:$0xff] }
0x2b70   :  { %1627 = vmatpush.msra.mxu3 %v1601_v3 }
0x2b71   :  { %v1388_v5 = vadd.f32 %v1386_v4, %v2325_v30  ;;  %v1600_v4 = vld [vmem:[#allocation2 + $0x1a0] sm:$0xff] }
0x2b72   :  { %1628 = vmatpush.msra.mxu3 %v1600_v4 }
0x2b73   :  { %v1389_v6 = vmul.f32 %v1388_v5, %v2258_v49 }
0x2b75   :  { %1826 = vtanh.f32 %v1389_v6 }
0x2b7b   :  { %v1827_v9 = vpop.eup %1826 }
0x2b7c   :  { %v1391_v12 = vmul.f32 %v1827_v9, %v2258_v49 }
0x2b7e   :  { %v1392_v13 = vadd.f32 %v1391_v12, %v2264_v0 }
0x2b80   :  { %1395 = vrot.lane.b32.xlu1 %v1392_v13, %s1897_s0  ;;  %v1393_v20 = vmul.f32 %v1392_v13, %v1356_v22 }
0x2bf2   :  { %v1396_v14 = vpop.permute.xlu1 %1395 }
0x2bf3   :  { %v1398_v19 = vmul.f32 %v1396_v14, %v1392_v13 }
0x2bf5   :  { %1400 = vrot.lane.b32.xlu2 %v1398_v19, %s1899_s13 }
0x2c4f   :  { %v1401_v25 = vpop.permute.xlu2 %1400 }
0x2c50   :  { %v1403_v26 = vadd.f32 %v1401_v25, %v1393_v20 }
0x2c52   :  { %1828 = vtanh.f32 %v1403_v26 }
0x2c58   :  { %v1829_v27 = vpop.eup %1828 }
0x2c59   :  { %1406 = vrot.lane.b32.xlu0 %v1829_v27, %s1897_s0 }
0x2ccb   :  { %v1407_v28 = vpop.permute.xlu0 %1406 }
0x2ccc   :  { %v1409_v29 = vmul.f32 %v1407_v28, %v1392_v13  ;;  %v1602_v13 = vld [vmem:[#allocation2 + $0x1c6] ss:$0 sm:$0xff] }
0x2cce   :  { %v1570_v31 = vrot.slane %v1409_v29, 4  ;;  %1411 = vrot.lane.b32.xlu1 %v1409_v29, %s1899_s13 }
0x2cd0   :  { %v1596_v7 = vsel %vm1585_vm8, %v1595_v1, %v1570_v31 }
0x2d40   :  { %v1412_v8 = vpop.permute.xlu1 %1411 }
0x2d41   :  { %1705 = vmatmul.msk.f32.vlgmr.msra.gmra.mxu0 %vm732_vm3, %v1412_v8 }
0x2dbe   :  { %v1432_v21 = vpop.f32.mrf.mxu0 }
0x2dbf   :  { %v1433_v23 = vadd.f32 %v1432_v21, %v2254_v47 }
0x2dc1   :  { %v1435_v34 = vadd.f32 %v1433_v23, %v2256_v48 }
0x2dc3   :  { %v1436_v51 = vmul.f32 %v1435_v34, %v2258_v49 }
0x2dc5   :  { %1830 = vtanh.f32 %v1436_v51 }
0x2dcb   :  { %v1831_v52 = vpop.eup %1830 }
0x2dcc   :  { %v1438_v53 = vmul.f32 %v1831_v52, %v2258_v49 }
0x2dce   :  { %v1439_v54 = vadd.f32 %v1438_v53, %v2264_v0 }
0x2dd0   :  { %1442 = vrot.lane.b32.xlu2 %v1439_v54, %s1897_s0  ;;  %v1440_v57 = vmul.f32 %v1439_v54, %v1403_v26 }
0x2e2a   :  { %v1443_v55 = vpop.permute.xlu2 %1442 }
0x2e2b   :  { %v1445_v56 = vmul.f32 %v1443_v55, %v1439_v54 }
0x2e2d   :  { %1447 = vrot.lane.b32.xlu0 %v1445_v56, %s1899_s13 }
0x2e9f   :  { %v1448_v58 = vpop.permute.xlu0 %1447 }
0x2ea0   :  { %v1450_v59 = vadd.f32 %v1448_v58, %v1440_v57 }
0x2ea2   :  { %1832 = vtanh.f32 %v1450_v59 }
0x2ea8   :  { %v1833_v60 = vpop.eup %1832 }
0x2ea9   :  { %1453 = vrot.lane.b32.xlu1 %v1833_v60, %s1897_s0 }
0x2f1b   :  { %v1454_v48 = vpop.permute.xlu1 %1453 }
0x2f1c   :  { %v1456_v61 = vmul.f32 %v1454_v48, %v1439_v54 }
0x2f1e   :  { %v1572_v62 = vrot.slane %v1456_v61, 3  ;;  %1458 = vrot.lane.b32.xlu2 %v1456_v61, %s1899_s13 }
0x2f20   :  { %v1597_v35 = vsel %vm1587_vm9, %v1596_v7, %v1572_v62 }
0x2f78   :  { %v1459_v36 = vpop.permute.xlu2 %1458 }
0x2f79   :  { %1706 = vmatmul.msk.f32.vlgmr.msrb.gmra.mxu1 %vm732_vm3, %v1459_v36 }
0x2ff6   :  { %v1479_v37 = vpop.f32.mrf.mxu1 }
0x2ff7   :  { %v1480_v32 = vadd.f32 %v1479_v37, %v2254_v47 }
0x2ff9   :  { %v1482_v33 = vadd.f32 %v1480_v32, %v2325_v30 }
0x2ffb   :  { %v1483_v16 = vmul.f32 %v1482_v33, %v2258_v49 }
0x2ffd   :  { %1834 = vtanh.f32 %v1483_v16 }
0x3003   :  { %v1835_v18 = vpop.eup %1834 }
0x3004   :  { %v1485_v38 = vmul.f32 %v1835_v18, %v2258_v49 }
0x3006   :  { %v1486_v39 = vadd.f32 %v1485_v38, %v2264_v0 }
0x3008   :  { %1489 = vrot.lane.b32.xlu0 %v1486_v39, %s1897_s0  ;;  %v1487_v11 = vmul.f32 %v1486_v39, %v1450_v59 }
0x307a   :  { %v1490_v40 = vpop.permute.xlu0 %1489 }
0x307b   :  { %v1492_v10 = vmul.f32 %v1490_v40, %v1486_v39 }
0x307d   :  { %1494 = vrot.lane.b32.xlu1 %v1492_v10, %s1899_s13 }
0x30ef   :  { %v1495_v42 = vpop.permute.xlu1 %1494 }
0x30f0   :  { %v1497_v43 = vadd.f32 %v1495_v42, %v1487_v11 }
0x30f2   :  { %1836 = vtanh.f32 %v1497_v43 }
0x30f8   :  { %v1837_v44 = vpop.eup %1836 }
0x30f9   :  { %1500 = vrot.lane.b32.xlu2 %v1837_v44, %s1897_s0 }
0x3153   :  { %v1501_v30 = vpop.permute.xlu2 %1500 }
0x3154   :  { %v1503_v15 = vmul.f32 %v1501_v30, %v1486_v39 }
0x3156   :  { %v1574_v17 = vrot.slane %v1503_v15, 2  ;;  %1505 = vrot.lane.b32.xlu0 %v1503_v15, %s1899_s13 }
0x3158   :  { %v1598_v45 = vsel %vm1589_vm10, %v1597_v35, %v1574_v17 }
0x31c8   :  { %v1506_v22 = vpop.permute.xlu0 %1505 }
0x31c9   :  { %1707 = vmatmul.msk.f32.vlgmr.msrb.gmra.mxu2 %vm732_vm3, %v1506_v22 }
0x324c   :  { %v1526_v24 = vpop.f32.mrf.mxu2 }
0x324d   :  { %v1527_v46 = vadd.f32 %v1526_v24, %v2254_v47 }
0x324f   :  { %v1529_v50 = vmul.f32 %v1527_v46, %v2258_v49 }
0x3251   :  { %1838 = vtanh.f32 %v1529_v50 }
0x3257   :  { %v1839_v63 = vpop.eup %1838 }
0x3258   :  { %v1531_v1 = vmul.f32 %v1839_v63, %v2258_v49 }
0x325a   :  { %v1532_v2 = vadd.f32 %v1531_v1, %v2264_v0 }
0x325c   :  { %1535 = vrot.lane.b32.xlu1 %v1532_v2, %s1897_s0  ;;  %v1533_v9 = vmul.f32 %v1532_v2, %v1497_v43 }
0x3264   :  { %1605 = vrot.lane.b32.xlu1 %v2441_v41, %s1896_s12 }
0x32ce   :  { %v1536_v5 = vpop.permute.xlu1 %1535 }
0x32cf   :  { %v1538_v6 = vmul.f32 %v1536_v5, %v1532_v2 }
0x32d1   :  { %1540 = vrot.lane.b32.xlu2 %v1538_v6, %s1899_s13 }
0x32d6   :  { %v1606_v47 = vpop.permute.xlu1 %1605 }
0x32d7   :  { %1708 = vmatmul.msk.f32.vlgmr.msra.gmra.mxu3 %vm44_vm0, %v1606_v47 }
0x332b   :  { %v1541_v49 = vpop.permute.xlu2 %1540 }
0x332c   :  { %v1543_v12 = vadd.f32 %v1541_v49, %v1533_v9 }
0x332e   :  { %1840 = vtanh.f32 %v1543_v12 }
0x3334   :  { %v1841_v0 = vpop.eup %1840 }
0x3335   :  { %1546 = vrot.lane.b32.xlu0 %v1841_v0, %s1897_s0 }
0x335a   :  { %v1630_v41 = vpop.f32.mrf.mxu3 }
0x335b   :  { %v1631_v14 = vadd.f32 %v1630_v41, %v1602_v13 }
0x335d   :  { %1636 = vst [vmem:[#allocation5] sm:$0xff] %v1631_v14 }
0x33a7   :  { %v1547_v19 = vpop.permute.xlu0 %1546 }
0x33a8   :  { %v1549_v20 = vmul.f32 %v1547_v19, %v1532_v2 }
0x33aa   :  { %v1577_v25 = vrot.slane %v1549_v20, 1 }
0x33ac   :  { %v1599_v26 = vsel %vm1591_vm11, %v1598_v45, %v1577_v25 }
0x33ad   :  { %1607 = vrot.lane.b32.xlu2 %v1599_v26, %s1896_s12 }
0x3407   :  { %v1608_v27 = vpop.permute.xlu2 %1607 }
0x3408   :  { %1709 = vmatmul.msk.f32.gmra.mxu3 %vm44_vm0, %v1608_v27 }
0x348b   :  { %v1633_v28 = vpop.f32.mrf.mxu3 }
0x348c   :  { %v1634_v29 = vadd.f32 %v1633_v28, %v1602_v13 }
0x348e   :  { %1637 = vst [vmem:[#allocation5 + $0x8] sm:$0xff] %v1634_v29 }
0x348f   :  { %1650 = dma.vmem_to_hbm [thread:$0]  %s1643_s16, 256, %s1645_s19, [#allocation4], %s1902_s20, %s1902_s20, %s1903_s21  }
0x3490   :  { %1892 = dma.done.wait [#allocation4], 256  }
0x3491   :  { %1893 = vsyncadd [#allocation4], 4294967040 }
0x3492   :  { %1655 = vsyncpa [#allocation3], 1 }
0x3493   :  { %1656 = vsyncpa [#allocation4], 1 }

</bundles_post_ra>
